<compile_context>
chip_gen: v7x
topology: tpu7x:2x2x1
jax: 0.10.0
libtpu: 0.0.40
codegen_flags: <defaults>
</compile_context>

<pallas_src>
import jax
import jax.numpy as jnp
from jax import lax
from jax.experimental import pallas as pl
from jax.experimental.pallas import tpu as pltpu

HIDDEN = 128
INPUT = 10
NUM_CLF = 11
CLF_OUT = 2
CLF_REAL = NUM_CLF * CLF_OUT          # 22 real output columns
CLF_PAD = 128                         # lane-dense padded output width


def gru_block_kernel(x_ref, h0_ref, wih_ref, whh_ref, bgi_ref, bhn_ref,
                     wc_ref, bc_ref, out_ref, hout_ref,
                     h_scr, gi_scr, hs_scr):
    """One grid step processes `block_t` timesteps.

    x_ref   : (block_t*B, INPUT)        time-block of inputs (flattened T,B)
    h0_ref  : (B, H)                    initial hidden state
    wih_ref : (INPUT, 3H)               W_ih^T
    whh_ref : (H, 3H)                   W_hh^T
    bgi_ref : (1, 3H)                   b_ih + [b_hh_r, b_hh_z, 0]
    bhn_ref : (1, H)                    b_hh (n gate only)
    wc_ref  : (H, CLF_PAD)              stacked classifier weights (zero-padded)
    bc_ref  : (1, CLF_PAD)              stacked classifier bias (zero-padded)
    out_ref : (block_t*B, CLF_PAD)      lane-dense classifier outputs
    hout_ref: (B, H)                    final hidden state (written last step only)
    h_scr   : (B, H)                    hidden carry across grid steps
    gi_scr  : (block_t*B, 3H)           hoisted input projection for this block
    hs_scr  : (block_t*B, H)            per-step hidden states of this block
    """
    i = pl.program_id(0)
    H = HIDDEN
    B = h_scr.shape[0]
    TT = gi_scr.shape[0] // B

    @pl.when(i == 0)
    def _():
        h_scr[...] = h0_ref[...]

    # Hoisted input projection: one batched MXU matmul for the whole time-block
    # (replaces block_t tiny K=10 matmuls on the sequential path).
    gi_scr[...] = (
        jnp.dot(x_ref[...], wih_ref[...], preferred_element_type=jnp.float32)
        + bgi_ref[...]
    )

    whh = whh_ref[...]
    b_hn = bhn_ref[...]

    def step(t, h):
        row = pl.multiple_of(t * B, B)
        gi = gi_scr[pl.ds(row, B), :]                                  # (B, 3H)
        gh = jnp.dot(h, whh, preferred_element_type=jnp.float32)       # (B, 3H)
        r = jax.nn.sigmoid(gi[:, 0:H] + gh[:, 0:H])
        z = jax.nn.sigmoid(gi[:, H:2 * H] + gh[:, H:2 * H])
        n = jnp.tanh(gi[:, 2 * H:3 * H] + r * (gh[:, 2 * H:3 * H] + b_hn))
        h_new = (1.0 - z) * n + z * h
        hs_scr[pl.ds(row, B), :] = h_new
        return h_new

    h_final = lax.fori_loop(0, TT, step, h_scr[...], unroll=True)
    h_scr[...] = h_final

    # Classifier: sigmoid(GRU output) then 11 stacked Linear(128,2) heads + sigmoid,
    # batched over the whole time-block, lane-dense 128-wide output.
    s = jax.nn.sigmoid(hs_scr[...])                                    # (TT*B, H)
    logits = jnp.dot(s, wc_ref[...], preferred_element_type=jnp.float32) + bc_ref[...]
    out_ref[...] = jax.nn.sigmoid(logits)                              # (TT*B, CLF_PAD)

    @pl.when(i == pl.num_programs(0) - 1)
    def _():
        hout_ref[...] = h_final


def _pick_block_t(T):
    if T <= 32:
        return T
    for tt in range(32, 0, -1):
        if T % tt == 0:
            return tt
    return 1


def gru_arch_forward(x, hidden, params, block_t=None):
    """x: (T, B, INPUT) f32, hidden: (1, B, HIDDEN) f32.

    Returns ([11 x (T, B, 2)], (1, B, HIDDEN)) matching the PyTorch forward.
    """
    T, B, _ = x.shape
    if block_t is None:
        block_t = _pick_block_t(T)
    assert T % block_t == 0, "block_t must divide T"
    nblk = T // block_t
    H = HIDDEN

    # Parameter prep (JAX glue, one-time).
    wih_t = params["w_ih"].T                                  # (INPUT, 3H)
    whh_t = params["w_hh"].T                                  # (H, 3H)
    b_gi = (params["b_ih"]
            + jnp.concatenate([params["b_hh"][:2 * H],
                               jnp.zeros((H,), jnp.float32)]))[None, :]   # (1, 3H)
    b_hn = params["b_hh"][2 * H:3 * H][None, :]               # (1, H)
    wc = jnp.concatenate([w.T for w in params["clf_w"]], axis=1)          # (H, 22)
    bc = jnp.concatenate(params["clf_b"], axis=0)                         # (22,)
    wc_pad = jnp.zeros((H, CLF_PAD), jnp.float32).at[:, :CLF_REAL].set(wc)
    bc_pad = jnp.zeros((1, CLF_PAD), jnp.float32).at[:, :CLF_REAL].set(bc)

    x2d = x.reshape(T * B, INPUT)
    h0 = hidden[0]                                            # (B, H)

    out2d, h_last = pl.pallas_call(
        gru_block_kernel,
        out_shape=(
            jax.ShapeDtypeStruct((T * B, CLF_PAD), jnp.float32),
            jax.ShapeDtypeStruct((B, HIDDEN), jnp.float32),
        ),
        grid_spec=pltpu.PrefetchScalarGridSpec(
            num_scalar_prefetch=0,
            grid=(nblk,),
            in_specs=[
                pl.BlockSpec((block_t * B, INPUT), lambda i: (i, 0)),        # x block
                pl.BlockSpec((B, HIDDEN), lambda i: (0, 0)),                 # h0
                pl.BlockSpec((INPUT, 3 * HIDDEN), lambda i: (0, 0)),         # W_ih^T
                pl.BlockSpec((HIDDEN, 3 * HIDDEN), lambda i: (0, 0)),        # W_hh^T
                pl.BlockSpec((1, 3 * HIDDEN), lambda i: (0, 0)),             # folded bias
                pl.BlockSpec((1, HIDDEN), lambda i: (0, 0)),                 # b_hh (n gate)
                pl.BlockSpec((HIDDEN, CLF_PAD), lambda i: (0, 0)),           # clf W (padded)
                pl.BlockSpec((1, CLF_PAD), lambda i: (0, 0)),                # clf b (padded)
            ],
            out_specs=[
                pl.BlockSpec((block_t * B, CLF_PAD), lambda i: (i, 0)),      # lane-dense out
                pl.BlockSpec((B, HIDDEN), lambda i: (0, 0)),                 # final hidden
            ],
            scratch_shapes=[
                pltpu.VMEM((B, HIDDEN), jnp.float32),              # hidden carry
                pltpu.VMEM((block_t * B, 3 * HIDDEN), jnp.float32),  # hoisted gi
                pltpu.VMEM((block_t * B, HIDDEN), jnp.float32),    # per-step hidden states
            ],
        ),
        compiler_params=pltpu.CompilerParams(
            dimension_semantics=("arbitrary",)),  # recurrence: must be sequential
    )(x2d, h0, wih_t, whh_t, b_gi, b_hn, wc_pad, bc_pad)

    out = out2d.reshape(T, B, CLF_PAD)
    outs = [out[:, :, i * CLF_OUT:(i + 1) * CLF_OUT] for i in range(NUM_CLF)]
    return outs, h_last[None]


def reference_forward(x, hidden, params):
    """Pure-JAX reference mirroring torch.nn.GRU semantics."""
    w_ih, w_hh = params["w_ih"], params["w_hh"]
    b_ih, b_hh = params["b_ih"], params["b_hh"]
    H = HIDDEN

    def step(h, x_t):
        gi = x_t @ w_ih.T + b_ih
        gh = h @ w_hh.T + b_hh
        r = jax.nn.sigmoid(gi[:, :H] + gh[:, :H])
        z = jax.nn.sigmoid(gi[:, H:2 * H] + gh[:, H:2 * H])
        n = jnp.tanh(gi[:, 2 * H:] + r * gh[:, 2 * H:])
        h_new = (1.0 - z) * n + z * h
        return h_new, h_new

    h_last, seq = lax.scan(step, hidden[0], x)
    s = jax.nn.sigmoid(seq)
    outs = [jax.nn.sigmoid(s @ w.T + b) for w, b in zip(params["clf_w"], params["clf_b"])]
    return outs, h_last[None]


def init_params(key):
    """Deterministic parameter init (PyTorch-style uniform(-1/sqrt(H), 1/sqrt(H)))."""
    bound = 1.0 / jnp.sqrt(jnp.float32(HIDDEN))
    keys = jax.random.split(key, 4 + 2 * NUM_CLF)
    u = lambda k, shape: jax.random.uniform(k, shape, jnp.float32, -bound, bound)
    params = {
        "w_ih": u(keys[0], (3 * HIDDEN, INPUT)),
        "w_hh": u(keys[1], (3 * HIDDEN, HIDDEN)),
        "b_ih": u(keys[2], (3 * HIDDEN,)),
        "b_hh": u(keys[3], (3 * HIDDEN,)),
        "clf_w": [u(keys[4 + 2 * i], (CLF_OUT, HIDDEN)) for i in range(NUM_CLF)],
        "clf_b": [u(keys[5 + 2 * i], (CLF_OUT,)) for i in range(NUM_CLF)],
    }
    return params


if __name__ == "__main__":
    key = jax.random.PRNGKey(0)
    k_p, k_x = jax.random.split(key)
    params = init_params(k_p)

    # --- Test 1: small shapes, single time-block (grid=(1,)) ---
    T, B = 6, 8
    x = jax.random.normal(k_x, (T, B, INPUT), jnp.float32)
    hidden = jnp.zeros((1, B, HIDDEN), jnp.float32)  # init_hidden(batch_size)

    outs, h_out = gru_arch_forward(x, hidden, params)
    outs = [jax.block_until_ready(o) for o in outs]
    h_out = jax.block_until_ready(h_out)

    ref_outs, ref_h = reference_forward(x, hidden, params)
    assert h_out.shape == (1, B, HIDDEN)
    assert len(outs) == NUM_CLF and outs[0].shape == (T, B, CLF_OUT)
    for a, b in zip(outs, ref_outs):
        assert jnp.allclose(a, b, atol=1e-4), "classifier output mismatch (T=6)"
    assert jnp.allclose(h_out, ref_h, atol=1e-4), "hidden mismatch (T=6)"

    # --- Test 2: longer sequence, multiple time-blocks (grid=(4,), block_t=8) ---
    T2 = 32
    x2 = jax.random.normal(jax.random.PRNGKey(1), (T2, B, INPUT), jnp.float32)
    hidden2 = 0.1 * jax.random.normal(jax.random.PRNGKey(2), (1, B, HIDDEN), jnp.float32)

    outs2, h_out2 = gru_arch_forward(x2, hidden2, params, block_t=8)
    outs2 = [jax.block_until_ready(o) for o in outs2]
    h_out2 = jax.block_until_ready(h_out2)

    ref_outs2, ref_h2 = reference_forward(x2, hidden2, params)
    for a, b in zip(outs2, ref_outs2):
        assert jnp.allclose(a, b, atol=1e-4), "classifier output mismatch (T=32)"
    assert jnp.allclose(h_out2, ref_h2, atol=1e-4), "hidden mismatch (T=32)"

    print("KERNEL_OK")
</pallas_src>

<mosaic_0001>
module attributes {stable_mosaic.version = 11 : i64} {
  func.func @gru_block_kernel(%arg0: i32, %arg1: memref<48x10xf32, #tpu.memory_space<vmem>>, %arg2: memref<8x128xf32, #tpu.memory_space<vmem>>, %arg3: memref<10x384xf32, #tpu.memory_space<vmem>>, %arg4: memref<128x384xf32, #tpu.memory_space<vmem>>, %arg5: memref<1x384xf32, #tpu.memory_space<vmem>>, %arg6: memref<1x128xf32, #tpu.memory_space<vmem>>, %arg7: memref<128x128xf32, #tpu.memory_space<vmem>>, %arg8: memref<1x128xf32, #tpu.memory_space<vmem>>, %arg9: memref<48x128xf32, #tpu.memory_space<vmem>>, %arg10: memref<8x128xf32, #tpu.memory_space<vmem>>, %arg11: memref<8x128xf32, #tpu.memory_space<vmem>>, %arg12: memref<48x384xf32, #tpu.memory_space<vmem>>, %arg13: memref<48x128xf32, #tpu.memory_space<vmem>>) attributes {dimension_semantics = [#tpu.dimension_semantics<arbitrary>], iteration_bounds = array<i64: 1>, scalar_prefetch = 0 : i64, scratch_operands = 3 : i64, tpu.core_type = #tpu.core_type<tc>, window_params = [{transform_indices = @transform_0, window_bounds = array<i64: 48, 10>}, {pipeline_mode = #tpu.pipeline_mode<synchronous>, transform_indices = @transform_1, window_bounds = array<i64: 8, 128>}, {pipeline_mode = #tpu.pipeline_mode<synchronous>, transform_indices = @transform_2, window_bounds = array<i64: 10, 384>}, {pipeline_mode = #tpu.pipeline_mode<synchronous>, transform_indices = @transform_3, window_bounds = array<i64: 128, 384>}, {pipeline_mode = #tpu.pipeline_mode<synchronous>, transform_indices = @transform_4, window_bounds = array<i64: 1, 384>}, {pipeline_mode = #tpu.pipeline_mode<synchronous>, transform_indices = @transform_5, window_bounds = array<i64: 1, 128>}, {pipeline_mode = #tpu.pipeline_mode<synchronous>, transform_indices = @transform_6, window_bounds = array<i64: 128, 128>}, {pipeline_mode = #tpu.pipeline_mode<synchronous>, transform_indices = @transform_7, window_bounds = array<i64: 1, 128>}, {transform_indices = @transform_8, window_bounds = array<i64: 48, 128>}, {pipeline_mode = #tpu.pipeline_mode<synchronous>, transform_indices = @transform_9, window_bounds = array<i64: 8, 128>}]} {
    %c0_i32 = arith.constant 0 : i32
    %0 = arith.cmpi eq, %arg0, %c0_i32 : i32
    %1 = arith.extui %0 : i1 to i32
    %c0_i32_0 = arith.constant 0 : i32
    %2 = arith.cmpi ne, %1, %c0_i32_0 : i32
    scf.if %2 {
      %c0_71 = arith.constant 0 : index
      %c0_72 = arith.constant 0 : index
      %244 = vector.load %arg2[%c0_71, %c0_72] : memref<8x128xf32, #tpu.memory_space<vmem>>, vector<8x128xf32>
      %c0_73 = arith.constant 0 : index
      %c0_74 = arith.constant 0 : index
      %245 = vector.load %arg11[%c0_73, %c0_74] : memref<8x128xf32, #tpu.memory_space<vmem>>, vector<8x128xf32>
      tpu.vector_store %arg11[%c0_73, %c0_74], %244 {strides = array<i32>} : memref<8x128xf32, #tpu.memory_space<vmem>>, vector<8x128xf32>,
    } else {
    }
    %c0 = arith.constant 0 : index
    %c0_1 = arith.constant 0 : index
    %3 = vector.load %arg1[%c0, %c0_1] : memref<48x10xf32, #tpu.memory_space<vmem>>, vector<48x10xf32>
    %c0_2 = arith.constant 0 : index
    %c0_3 = arith.constant 0 : index
    %4 = vector.load %arg3[%c0_2, %c0_3] : memref<10x384xf32, #tpu.memory_space<vmem>>, vector<10x384xf32>
    %cst = arith.constant dense<0.000000e+00> : vector<48x384xf32>
    %5 = tpu.matmul %3, %4, %cst {dimension_numbers = #tpu.dot_dimension_numbers<[1], [0], [0], [1], [0, 0, 1, 1], [], []>} : vector<48x10xf32>, vector<10x384xf32>, vector<48x384xf32> -> vector<48x384xf32>
    %c0_4 = arith.constant 0 : index
    %c0_5 = arith.constant 0 : index
    %6 = vector.load %arg5[%c0_4, %c0_5] : memref<1x384xf32, #tpu.memory_space<vmem>>, vector<1x384xf32>
    %7 = vector.broadcast %6 : vector<1x384xf32> to vector<48x384xf32>
    %8 = arith.addf %5, %7 : vector<48x384xf32>
    %c0_6 = arith.constant 0 : index
    %c0_7 = arith.constant 0 : index
    %9 = vector.load %arg12[%c0_6, %c0_7] : memref<48x384xf32, #tpu.memory_space<vmem>>, vector<48x384xf32>
    tpu.vector_store %arg12[%c0_6, %c0_7], %8 {strides = array<i32>} : memref<48x384xf32, #tpu.memory_space<vmem>>, vector<48x384xf32>,
    %c0_8 = arith.constant 0 : index
    %c0_9 = arith.constant 0 : index
    %10 = vector.load %arg4[%c0_8, %c0_9] : memref<128x384xf32, #tpu.memory_space<vmem>>, vector<128x384xf32>
    %c0_10 = arith.constant 0 : index
    %c0_11 = arith.constant 0 : index
    %11 = vector.load %arg6[%c0_10, %c0_11] : memref<1x128xf32, #tpu.memory_space<vmem>>, vector<1x128xf32>
    %c0_12 = arith.constant 0 : index
    %c0_13 = arith.constant 0 : index
    %12 = vector.load %arg11[%c0_12, %c0_13] : memref<8x128xf32, #tpu.memory_space<vmem>>, vector<8x128xf32>
    %c0_i32_14 = arith.constant 0 : i32
    %c8_i32 = arith.constant 8 : i32
    %13 = arith.muli %c0_i32_14, %c8_i32 : i32
    %14 = tpu.assume_multiple %13, 8 : i32
    %15 = arith.index_cast %14 : i32 to index
    %c0_15 = arith.constant 0 : index
    %16 = vector.load %arg12[%15, %c0_15] : memref<48x384xf32, #tpu.memory_space<vmem>>, vector<8x384xf32>
    %cst_16 = arith.constant dense<0.000000e+00> : vector<8x384xf32>
    %17 = tpu.matmul %12, %10, %cst_16 {dimension_numbers = #tpu.dot_dimension_numbers<[1], [0], [0], [1], [0, 0, 1, 1], [], []>} : vector<8x128xf32>, vector<128x384xf32>, vector<8x384xf32> -> vector<8x384xf32>
    %18 = vector.extract_strided_slice %16 {offsets = [0, 0], sizes = [8, 128], strides = [1, 1]} : vector<8x384xf32> to vector<8x128xf32>
    %19 = vector.extract_strided_slice %17 {offsets = [0, 0], sizes = [8, 128], strides = [1, 1]} : vector<8x384xf32> to vector<8x128xf32>
    %20 = arith.addf %18, %19 : vector<8x128xf32>
    %21 = arith.negf %20 : vector<8x128xf32>
    %22 = math.exp %21 : vector<8x128xf32>
    %cst_17 = arith.constant 1.000000e+00 : f32
    %23 = vector.broadcast %cst_17 : f32 to vector<8x128xf32>
    %24 = arith.addf %23, %22 : vector<8x128xf32>
    %25 = arith.divf %23, %24 : vector<8x128xf32>
    %26 = vector.extract_strided_slice %16 {offsets = [0, 128], sizes = [8, 128], strides = [1, 1]} : vector<8x384xf32> to vector<8x128xf32>
    %27 = vector.extract_strided_slice %17 {offsets = [0, 128], sizes = [8, 128], strides = [1, 1]} : vector<8x384xf32> to vector<8x128xf32>
    %28 = arith.addf %26, %27 : vector<8x128xf32>
    %29 = arith.negf %28 : vector<8x128xf32>
    %30 = math.exp %29 : vector<8x128xf32>
    %cst_18 = arith.constant 1.000000e+00 : f32
    %31 = vector.broadcast %cst_18 : f32 to vector<8x128xf32>
    %32 = arith.addf %31, %30 : vector<8x128xf32>
    %33 = arith.divf %31, %32 : vector<8x128xf32>
    %34 = vector.extract_strided_slice %16 {offsets = [0, 256], sizes = [8, 128], strides = [1, 1]} : vector<8x384xf32> to vector<8x128xf32>
    %35 = vector.extract_strided_slice %17 {offsets = [0, 256], sizes = [8, 128], strides = [1, 1]} : vector<8x384xf32> to vector<8x128xf32>
    %36 = vector.broadcast %11 : vector<1x128xf32> to vector<8x128xf32>
    %37 = arith.addf %35, %36 : vector<8x128xf32>
    %38 = arith.mulf %25, %37 : vector<8x128xf32>
    %39 = arith.addf %34, %38 : vector<8x128xf32>
    %40 = math.tanh %39 : vector<8x128xf32>
    %cst_19 = arith.constant 1.000000e+00 : f32
    %41 = vector.broadcast %cst_19 : f32 to vector<8x128xf32>
    %42 = arith.subf %41, %33 : vector<8x128xf32>
    %43 = arith.mulf %42, %40 : vector<8x128xf32>
    %44 = arith.mulf %33, %12 : vector<8x128xf32>
    %45 = arith.addf %43, %44 : vector<8x128xf32>
    %46 = arith.index_cast %14 : i32 to index
    %c0_20 = arith.constant 0 : index
    %47 = vector.load %arg13[%46, %c0_20] : memref<48x128xf32, #tpu.memory_space<vmem>>, vector<8x128xf32>
    tpu.vector_store %arg13[%46, %c0_20], %45 {strides = array<i32>} : memref<48x128xf32, #tpu.memory_space<vmem>>, vector<8x128xf32>,
    %c1_i32 = arith.constant 1 : i32
    %c8_i32_21 = arith.constant 8 : i32
    %48 = arith.muli %c1_i32, %c8_i32_21 : i32
    %49 = tpu.assume_multiple %48, 8 : i32
    %50 = arith.index_cast %49 : i32 to index
    %c0_22 = arith.constant 0 : index
    %51 = vector.load %arg12[%50, %c0_22] : memref<48x384xf32, #tpu.memory_space<vmem>>, vector<8x384xf32>
    %cst_23 = arith.constant dense<0.000000e+00> : vector<8x384xf32>
    %52 = tpu.matmul %45, %10, %cst_23 {dimension_numbers = #tpu.dot_dimension_numbers<[1], [0], [0], [1], [0, 0, 1, 1], [], []>} : vector<8x128xf32>, vector<128x384xf32>, vector<8x384xf32> -> vector<8x384xf32>
    %53 = vector.extract_strided_slice %51 {offsets = [0, 0], sizes = [8, 128], strides = [1, 1]} : vector<8x384xf32> to vector<8x128xf32>
    %54 = vector.extract_strided_slice %52 {offsets = [0, 0], sizes = [8, 128], strides = [1, 1]} : vector<8x384xf32> to vector<8x128xf32>
    %55 = arith.addf %53, %54 : vector<8x128xf32>
    %56 = arith.negf %55 : vector<8x128xf32>
    %57 = math.exp %56 : vector<8x128xf32>
    %cst_24 = arith.constant 1.000000e+00 : f32
    %58 = vector.broadcast %cst_24 : f32 to vector<8x128xf32>
    %59 = arith.addf %58, %57 : vector<8x128xf32>
    %60 = arith.divf %58, %59 : vector<8x128xf32>
    %61 = vector.extract_strided_slice %51 {offsets = [0, 128], sizes = [8, 128], strides = [1, 1]} : vector<8x384xf32> to vector<8x128xf32>
    %62 = vector.extract_strided_slice %52 {offsets = [0, 128], sizes = [8, 128], strides = [1, 1]} : vector<8x384xf32> to vector<8x128xf32>
    %63 = arith.addf %61, %62 : vector<8x128xf32>
    %64 = arith.negf %63 : vector<8x128xf32>
    %65 = math.exp %64 : vector<8x128xf32>
    %cst_25 = arith.constant 1.000000e+00 : f32
    %66 = vector.broadcast %cst_25 : f32 to vector<8x128xf32>
    %67 = arith.addf %66, %65 : vector<8x128xf32>
    %68 = arith.divf %66, %67 : vector<8x128xf32>
    %69 = vector.extract_strided_slice %51 {offsets = [0, 256], sizes = [8, 128], strides = [1, 1]} : vector<8x384xf32> to vector<8x128xf32>
    %70 = vector.extract_strided_slice %52 {offsets = [0, 256], sizes = [8, 128], strides = [1, 1]} : vector<8x384xf32> to vector<8x128xf32>
    %71 = vector.broadcast %11 : vector<1x128xf32> to vector<8x128xf32>
    %72 = arith.addf %70, %71 : vector<8x128xf32>
    %73 = arith.mulf %60, %72 : vector<8x128xf32>
    %74 = arith.addf %69, %73 : vector<8x128xf32>
    %75 = math.tanh %74 : vector<8x128xf32>
    %cst_26 = arith.constant 1.000000e+00 : f32
    %76 = vector.broadcast %cst_26 : f32 to vector<8x128xf32>
    %77 = arith.subf %76, %68 : vector<8x128xf32>
    %78 = arith.mulf %77, %75 : vector<8x128xf32>
    %79 = arith.mulf %68, %45 : vector<8x128xf32>
    %80 = arith.addf %78, %79 : vector<8x128xf32>
    %81 = arith.index_cast %49 : i32 to index
    %c0_27 = arith.constant 0 : index
    %82 = vector.load %arg13[%81, %c0_27] : memref<48x128xf32, #tpu.memory_space<vmem>>, vector<8x128xf32>
    tpu.vector_store %arg13[%81, %c0_27], %80 {strides = array<i32>} : memref<48x128xf32, #tpu.memory_space<vmem>>, vector<8x128xf32>,
    %c2_i32 = arith.constant 2 : i32
    %c8_i32_28 = arith.constant 8 : i32
    %83 = arith.muli %c2_i32, %c8_i32_28 : i32
    %84 = tpu.assume_multiple %83, 8 : i32
    %85 = arith.index_cast %84 : i32 to index
    %c0_29 = arith.constant 0 : index
    %86 = vector.load %arg12[%85, %c0_29] : memref<48x384xf32, #tpu.memory_space<vmem>>, vector<8x384xf32>
    %cst_30 = arith.constant dense<0.000000e+00> : vector<8x384xf32>
    %87 = tpu.matmul %80, %10, %cst_30 {dimension_numbers = #tpu.dot_dimension_numbers<[1], [0], [0], [1], [0, 0, 1, 1], [], []>} : vector<8x128xf32>, vector<128x384xf32>, vector<8x384xf32> -> vector<8x384xf32>
    %88 = vector.extract_strided_slice %86 {offsets = [0, 0], sizes = [8, 128], strides = [1, 1]} : vector<8x384xf32> to vector<8x128xf32>
    %89 = vector.extract_strided_slice %87 {offsets = [0, 0], sizes = [8, 128], strides = [1, 1]} : vector<8x384xf32> to vector<8x128xf32>
    %90 = arith.addf %88, %89 : vector<8x128xf32>
    %91 = arith.negf %90 : vector<8x128xf32>
    %92 = math.exp %91 : vector<8x128xf32>
    %cst_31 = arith.constant 1.000000e+00 : f32
    %93 = vector.broadcast %cst_31 : f32 to vector<8x128xf32>
    %94 = arith.addf %93, %92 : vector<8x128xf32>
    %95 = arith.divf %93, %94 : vector<8x128xf32>
    %96 = vector.extract_strided_slice %86 {offsets = [0, 128], sizes = [8, 128], strides = [1, 1]} : vector<8x384xf32> to vector<8x128xf32>
    %97 = vector.extract_strided_slice %87 {offsets = [0, 128], sizes = [8, 128], strides = [1, 1]} : vector<8x384xf32> to vector<8x128xf32>
    %98 = arith.addf %96, %97 : vector<8x128xf32>
    %99 = arith.negf %98 : vector<8x128xf32>
    %100 = math.exp %99 : vector<8x128xf32>
    %cst_32 = arith.constant 1.000000e+00 : f32
    %101 = vector.broadcast %cst_32 : f32 to vector<8x128xf32>
    %102 = arith.addf %101, %100 : vector<8x128xf32>
    %103 = arith.divf %101, %102 : vector<8x128xf32>
    %104 = vector.extract_strided_slice %86 {offsets = [0, 256], sizes = [8, 128], strides = [1, 1]} : vector<8x384xf32> to vector<8x128xf32>
    %105 = vector.extract_strided_slice %87 {offsets = [0, 256], sizes = [8, 128], strides = [1, 1]} : vector<8x384xf32> to vector<8x128xf32>
    %106 = vector.broadcast %11 : vector<1x128xf32> to vector<8x128xf32>
    %107 = arith.addf %105, %106 : vector<8x128xf32>
    %108 = arith.mulf %95, %107 : vector<8x128xf32>
    %109 = arith.addf %104, %108 : vector<8x128xf32>
    %110 = math.tanh %109 : vector<8x128xf32>
    %cst_33 = arith.constant 1.000000e+00 : f32
    %111 = vector.broadcast %cst_33 : f32 to vector<8x128xf32>
    %112 = arith.subf %111, %103 : vector<8x128xf32>
    %113 = arith.mulf %112, %110 : vector<8x128xf32>
    %114 = arith.mulf %103, %80 : vector<8x128xf32>
    %115 = arith.addf %113, %114 : vector<8x128xf32>
    %116 = arith.index_cast %84 : i32 to index
    %c0_34 = arith.constant 0 : index
    %117 = vector.load %arg13[%116, %c0_34] : memref<48x128xf32, #tpu.memory_space<vmem>>, vector<8x128xf32>
    tpu.vector_store %arg13[%116, %c0_34], %115 {strides = array<i32>} : memref<48x128xf32, #tpu.memory_space<vmem>>, vector<8x128xf32>,
    %c3_i32 = arith.constant 3 : i32
    %c8_i32_35 = arith.constant 8 : i32
    %118 = arith.muli %c3_i32, %c8_i32_35 : i32
    %119 = tpu.assume_multiple %118, 8 : i32
    %120 = arith.index_cast %119 : i32 to index
    %c0_36 = arith.constant 0 : index
    %121 = vector.load %arg12[%120, %c0_36] : memref<48x384xf32, #tpu.memory_space<vmem>>, vector<8x384xf32>
    %cst_37 = arith.constant dense<0.000000e+00> : vector<8x384xf32>
    %122 = tpu.matmul %115, %10, %cst_37 {dimension_numbers = #tpu.dot_dimension_numbers<[1], [0], [0], [1], [0, 0, 1, 1], [], []>} : vector<8x128xf32>, vector<128x384xf32>, vector<8x384xf32> -> vector<8x384xf32>
    %123 = vector.extract_strided_slice %121 {offsets = [0, 0], sizes = [8, 128], strides = [1, 1]} : vector<8x384xf32> to vector<8x128xf32>
    %124 = vector.extract_strided_slice %122 {offsets = [0, 0], sizes = [8, 128], strides = [1, 1]} : vector<8x384xf32> to vector<8x128xf32>
    %125 = arith.addf %123, %124 : vector<8x128xf32>
    %126 = arith.negf %125 : vector<8x128xf32>
    %127 = math.exp %126 : vector<8x128xf32>
    %cst_38 = arith.constant 1.000000e+00 : f32
    %128 = vector.broadcast %cst_38 : f32 to vector<8x128xf32>
    %129 = arith.addf %128, %127 : vector<8x128xf32>
    %130 = arith.divf %128, %129 : vector<8x128xf32>
    %131 = vector.extract_strided_slice %121 {offsets = [0, 128], sizes = [8, 128], strides = [1, 1]} : vector<8x384xf32> to vector<8x128xf32>
    %132 = vector.extract_strided_slice %122 {offsets = [0, 128], sizes = [8, 128], strides = [1, 1]} : vector<8x384xf32> to vector<8x128xf32>
    %133 = arith.addf %131, %132 : vector<8x128xf32>
    %134 = arith.negf %133 : vector<8x128xf32>
    %135 = math.exp %134 : vector<8x128xf32>
    %cst_39 = arith.constant 1.000000e+00 : f32
    %136 = vector.broadcast %cst_39 : f32 to vector<8x128xf32>
    %137 = arith.addf %136, %135 : vector<8x128xf32>
    %138 = arith.divf %136, %137 : vector<8x128xf32>
    %139 = vector.extract_strided_slice %121 {offsets = [0, 256], sizes = [8, 128], strides = [1, 1]} : vector<8x384xf32> to vector<8x128xf32>
    %140 = vector.extract_strided_slice %122 {offsets = [0, 256], sizes = [8, 128], strides = [1, 1]} : vector<8x384xf32> to vector<8x128xf32>
    %141 = vector.broadcast %11 : vector<1x128xf32> to vector<8x128xf32>
    %142 = arith.addf %140, %141 : vector<8x128xf32>
    %143 = arith.mulf %130, %142 : vector<8x128xf32>
    %144 = arith.addf %139, %143 : vector<8x128xf32>
    %145 = math.tanh %144 : vector<8x128xf32>
    %cst_40 = arith.constant 1.000000e+00 : f32
    %146 = vector.broadcast %cst_40 : f32 to vector<8x128xf32>
    %147 = arith.subf %146, %138 : vector<8x128xf32>
    %148 = arith.mulf %147, %145 : vector<8x128xf32>
    %149 = arith.mulf %138, %115 : vector<8x128xf32>
    %150 = arith.addf %148, %149 : vector<8x128xf32>
    %151 = arith.index_cast %119 : i32 to index
    %c0_41 = arith.constant 0 : index
    %152 = vector.load %arg13[%151, %c0_41] : memref<48x128xf32, #tpu.memory_space<vmem>>, vector<8x128xf32>
    tpu.vector_store %arg13[%151, %c0_41], %150 {strides = array<i32>} : memref<48x128xf32, #tpu.memory_space<vmem>>, vector<8x128xf32>,
    %c4_i32 = arith.constant 4 : i32
    %c8_i32_42 = arith.constant 8 : i32
    %153 = arith.muli %c4_i32, %c8_i32_42 : i32
    %154 = tpu.assume_multiple %153, 8 : i32
    %155 = arith.index_cast %154 : i32 to index
    %c0_43 = arith.constant 0 : index
    %156 = vector.load %arg12[%155, %c0_43] : memref<48x384xf32, #tpu.memory_space<vmem>>, vector<8x384xf32>
    %cst_44 = arith.constant dense<0.000000e+00> : vector<8x384xf32>
    %157 = tpu.matmul %150, %10, %cst_44 {dimension_numbers = #tpu.dot_dimension_numbers<[1], [0], [0], [1], [0, 0, 1, 1], [], []>} : vector<8x128xf32>, vector<128x384xf32>, vector<8x384xf32> -> vector<8x384xf32>
    %158 = vector.extract_strided_slice %156 {offsets = [0, 0], sizes = [8, 128], strides = [1, 1]} : vector<8x384xf32> to vector<8x128xf32>
    %159 = vector.extract_strided_slice %157 {offsets = [0, 0], sizes = [8, 128], strides = [1, 1]} : vector<8x384xf32> to vector<8x128xf32>
    %160 = arith.addf %158, %159 : vector<8x128xf32>
    %161 = arith.negf %160 : vector<8x128xf32>
    %162 = math.exp %161 : vector<8x128xf32>
    %cst_45 = arith.constant 1.000000e+00 : f32
    %163 = vector.broadcast %cst_45 : f32 to vector<8x128xf32>
    %164 = arith.addf %163, %162 : vector<8x128xf32>
    %165 = arith.divf %163, %164 : vector<8x128xf32>
    %166 = vector.extract_strided_slice %156 {offsets = [0, 128], sizes = [8, 128], strides = [1, 1]} : vector<8x384xf32> to vector<8x128xf32>
    %167 = vector.extract_strided_slice %157 {offsets = [0, 128], sizes = [8, 128], strides = [1, 1]} : vector<8x384xf32> to vector<8x128xf32>
    %168 = arith.addf %166, %167 : vector<8x128xf32>
    %169 = arith.negf %168 : vector<8x128xf32>
    %170 = math.exp %169 : vector<8x128xf32>
    %cst_46 = arith.constant 1.000000e+00 : f32
    %171 = vector.broadcast %cst_46 : f32 to vector<8x128xf32>
    %172 = arith.addf %171, %170 : vector<8x128xf32>
    %173 = arith.divf %171, %172 : vector<8x128xf32>
    %174 = vector.extract_strided_slice %156 {offsets = [0, 256], sizes = [8, 128], strides = [1, 1]} : vector<8x384xf32> to vector<8x128xf32>
    %175 = vector.extract_strided_slice %157 {offsets = [0, 256], sizes = [8, 128], strides = [1, 1]} : vector<8x384xf32> to vector<8x128xf32>
    %176 = vector.broadcast %11 : vector<1x128xf32> to vector<8x128xf32>
    %177 = arith.addf %175, %176 : vector<8x128xf32>
    %178 = arith.mulf %165, %177 : vector<8x128xf32>
    %179 = arith.addf %174, %178 : vector<8x128xf32>
    %180 = math.tanh %179 : vector<8x128xf32>
    %cst_47 = arith.constant 1.000000e+00 : f32
    %181 = vector.broadcast %cst_47 : f32 to vector<8x128xf32>
    %182 = arith.subf %181, %173 : vector<8x128xf32>
    %183 = arith.mulf %182, %180 : vector<8x128xf32>
    %184 = arith.mulf %173, %150 : vector<8x128xf32>
    %185 = arith.addf %183, %184 : vector<8x128xf32>
    %186 = arith.index_cast %154 : i32 to index
    %c0_48 = arith.constant 0 : index
    %187 = vector.load %arg13[%186, %c0_48] : memref<48x128xf32, #tpu.memory_space<vmem>>, vector<8x128xf32>
    tpu.vector_store %arg13[%186, %c0_48], %185 {strides = array<i32>} : memref<48x128xf32, #tpu.memory_space<vmem>>, vector<8x128xf32>,
    %c5_i32 = arith.constant 5 : i32
    %c8_i32_49 = arith.constant 8 : i32
    %188 = arith.muli %c5_i32, %c8_i32_49 : i32
    %189 = tpu.assume_multiple %188, 8 : i32
    %190 = arith.index_cast %189 : i32 to index
    %c0_50 = arith.constant 0 : index
    %191 = vector.load %arg12[%190, %c0_50] : memref<48x384xf32, #tpu.memory_space<vmem>>, vector<8x384xf32>
    %cst_51 = arith.constant dense<0.000000e+00> : vector<8x384xf32>
    %192 = tpu.matmul %185, %10, %cst_51 {dimension_numbers = #tpu.dot_dimension_numbers<[1], [0], [0], [1], [0, 0, 1, 1], [], []>} : vector<8x128xf32>, vector<128x384xf32>, vector<8x384xf32> -> vector<8x384xf32>
    %193 = vector.extract_strided_slice %191 {offsets = [0, 0], sizes = [8, 128], strides = [1, 1]} : vector<8x384xf32> to vector<8x128xf32>
    %194 = vector.extract_strided_slice %192 {offsets = [0, 0], sizes = [8, 128], strides = [1, 1]} : vector<8x384xf32> to vector<8x128xf32>
    %195 = arith.addf %193, %194 : vector<8x128xf32>
    %196 = arith.negf %195 : vector<8x128xf32>
    %197 = math.exp %196 : vector<8x128xf32>
    %cst_52 = arith.constant 1.000000e+00 : f32
    %198 = vector.broadcast %cst_52 : f32 to vector<8x128xf32>
    %199 = arith.addf %198, %197 : vector<8x128xf32>
    %200 = arith.divf %198, %199 : vector<8x128xf32>
    %201 = vector.extract_strided_slice %191 {offsets = [0, 128], sizes = [8, 128], strides = [1, 1]} : vector<8x384xf32> to vector<8x128xf32>
    %202 = vector.extract_strided_slice %192 {offsets = [0, 128], sizes = [8, 128], strides = [1, 1]} : vector<8x384xf32> to vector<8x128xf32>
    %203 = arith.addf %201, %202 : vector<8x128xf32>
    %204 = arith.negf %203 : vector<8x128xf32>
    %205 = math.exp %204 : vector<8x128xf32>
    %cst_53 = arith.constant 1.000000e+00 : f32
    %206 = vector.broadcast %cst_53 : f32 to vector<8x128xf32>
    %207 = arith.addf %206, %205 : vector<8x128xf32>
    %208 = arith.divf %206, %207 : vector<8x128xf32>
    %209 = vector.extract_strided_slice %191 {offsets = [0, 256], sizes = [8, 128], strides = [1, 1]} : vector<8x384xf32> to vector<8x128xf32>
    %210 = vector.extract_strided_slice %192 {offsets = [0, 256], sizes = [8, 128], strides = [1, 1]} : vector<8x384xf32> to vector<8x128xf32>
    %211 = vector.broadcast %11 : vector<1x128xf32> to vector<8x128xf32>
    %212 = arith.addf %210, %211 : vector<8x128xf32>
    %213 = arith.mulf %200, %212 : vector<8x128xf32>
    %214 = arith.addf %209, %213 : vector<8x128xf32>
    %215 = math.tanh %214 : vector<8x128xf32>
    %cst_54 = arith.constant 1.000000e+00 : f32
    %216 = vector.broadcast %cst_54 : f32 to vector<8x128xf32>
    %217 = arith.subf %216, %208 : vector<8x128xf32>
    %218 = arith.mulf %217, %215 : vector<8x128xf32>
    %219 = arith.mulf %208, %185 : vector<8x128xf32>
    %220 = arith.addf %218, %219 : vector<8x128xf32>
    %221 = arith.index_cast %189 : i32 to index
    %c0_55 = arith.constant 0 : index
    %222 = vector.load %arg13[%221, %c0_55] : memref<48x128xf32, #tpu.memory_space<vmem>>, vector<8x128xf32>
    tpu.vector_store %arg13[%221, %c0_55], %220 {strides = array<i32>} : memref<48x128xf32, #tpu.memory_space<vmem>>, vector<8x128xf32>,
    %c6_i32 = arith.constant 6 : i32
    %c0_56 = arith.constant 0 : index
    %c0_57 = arith.constant 0 : index
    %223 = vector.load %arg11[%c0_56, %c0_57] : memref<8x128xf32, #tpu.memory_space<vmem>>, vector<8x128xf32>
    tpu.vector_store %arg11[%c0_56, %c0_57], %220 {strides = array<i32>} : memref<8x128xf32, #tpu.memory_space<vmem>>, vector<8x128xf32>,
    %c0_58 = arith.constant 0 : index
    %c0_59 = arith.constant 0 : index
    %224 = vector.load %arg13[%c0_58, %c0_59] : memref<48x128xf32, #tpu.memory_space<vmem>>, vector<48x128xf32>
    %225 = arith.negf %224 : vector<48x128xf32>
    %226 = math.exp %225 : vector<48x128xf32>
    %cst_60 = arith.constant 1.000000e+00 : f32
    %227 = vector.broadcast %cst_60 : f32 to vector<48x128xf32>
    %228 = arith.addf %227, %226 : vector<48x128xf32>
    %229 = arith.divf %227, %228 : vector<48x128xf32>
    %c0_61 = arith.constant 0 : index
    %c0_62 = arith.constant 0 : index
    %230 = vector.load %arg7[%c0_61, %c0_62] : memref<128x128xf32, #tpu.memory_space<vmem>>, vector<128x128xf32>
    %cst_63 = arith.constant dense<0.000000e+00> : vector<48x128xf32>
    %231 = tpu.matmul %229, %230, %cst_63 {dimension_numbers = #tpu.dot_dimension_numbers<[1], [0], [0], [1], [0, 0, 1, 1], [], []>} : vector<48x128xf32>, vector<128x128xf32>, vector<48x128xf32> -> vector<48x128xf32>
    %c0_64 = arith.constant 0 : index
    %c0_65 = arith.constant 0 : index
    %232 = vector.load %arg8[%c0_64, %c0_65] : memref<1x128xf32, #tpu.memory_space<vmem>>, vector<1x128xf32>
    %233 = vector.broadcast %232 : vector<1x128xf32> to vector<48x128xf32>
    %234 = arith.addf %231, %233 : vector<48x128xf32>
    %235 = arith.negf %234 : vector<48x128xf32>
    %236 = math.exp %235 : vector<48x128xf32>
    %cst_66 = arith.constant 1.000000e+00 : f32
    %237 = vector.broadcast %cst_66 : f32 to vector<48x128xf32>
    %238 = arith.addf %237, %236 : vector<48x128xf32>
    %239 = arith.divf %237, %238 : vector<48x128xf32>
    %c0_67 = arith.constant 0 : index
    %c0_68 = arith.constant 0 : index
    %240 = vector.load %arg9[%c0_67, %c0_68] : memref<48x128xf32, #tpu.memory_space<vmem>>, vector<48x128xf32>
    tpu.vector_store %arg9[%c0_67, %c0_68], %239 {strides = array<i32>} : memref<48x128xf32, #tpu.memory_space<vmem>>, vector<48x128xf32>,
    %c0_i32_69 = arith.constant 0 : i32
    %241 = arith.cmpi eq, %arg0, %c0_i32_69 : i32
    %242 = arith.extui %241 : i1 to i32
    %c0_i32_70 = arith.constant 0 : i32
    %243 = arith.cmpi ne, %242, %c0_i32_70 : i32
    scf.if %243 {
      %c0_71 = arith.constant 0 : index
      %c0_72 = arith.constant 0 : index
      %244 = vector.load %arg10[%c0_71, %c0_72] : memref<8x128xf32, #tpu.memory_space<vmem>>, vector<8x128xf32>
      tpu.vector_store %arg10[%c0_71, %c0_72], %220 {strides = array<i32>} : memref<8x128xf32, #tpu.memory_space<vmem>>, vector<8x128xf32>,
    } else {
    }
    return
  }
  func.func @transform_0(%arg0: i32) -> (i32, i32) {
    %c0_i32 = arith.constant 0 : i32
    %c0_i32_0 = arith.constant 0 : i32
    return %arg0, %c0_i32 : i32, i32
  }
  func.func @transform_1(%arg0: i32) -> (i32, i32) {
    %c0_i32 = arith.constant 0 : i32
    %c0_i32_0 = arith.constant 0 : i32
    %c0_i32_1 = arith.constant 0 : i32
    return %c0_i32, %c0_i32_0 : i32, i32
  }
  func.func @transform_2(%arg0: i32) -> (i32, i32) {
    %c0_i32 = arith.constant 0 : i32
    %c0_i32_0 = arith.constant 0 : i32
    %c0_i32_1 = arith.constant 0 : i32
    return %c0_i32, %c0_i32_0 : i32, i32
  }
  func.func @transform_3(%arg0: i32) -> (i32, i32) {
    %c0_i32 = arith.constant 0 : i32
    %c0_i32_0 = arith.constant 0 : i32
    %c0_i32_1 = arith.constant 0 : i32
    return %c0_i32, %c0_i32_0 : i32, i32
  }
  func.func @transform_4(%arg0: i32) -> (i32, i32) {
    %c0_i32 = arith.constant 0 : i32
    %c0_i32_0 = arith.constant 0 : i32
    %c0_i32_1 = arith.constant 0 : i32
    return %c0_i32, %c0_i32_0 : i32, i32
  }
  func.func @transform_5(%arg0: i32) -> (i32, i32) {
    %c0_i32 = arith.constant 0 : i32
    %c0_i32_0 = arith.constant 0 : i32
    %c0_i32_1 = arith.constant 0 : i32
    return %c0_i32, %c0_i32_0 : i32, i32
  }
  func.func @transform_6(%arg0: i32) -> (i32, i32) {
    %c0_i32 = arith.constant 0 : i32
    %c0_i32_0 = arith.constant 0 : i32
    %c0_i32_1 = arith.constant 0 : i32
    return %c0_i32, %c0_i32_0 : i32, i32
  }
  func.func @transform_7(%arg0: i32) -> (i32, i32) {
    %c0_i32 = arith.constant 0 : i32
    %c0_i32_0 = arith.constant 0 : i32
    %c0_i32_1 = arith.constant 0 : i32
    return %c0_i32, %c0_i32_0 : i32, i32
  }
  func.func @transform_8(%arg0: i32) -> (i32, i32) {
    %c0_i32 = arith.constant 0 : i32
    %c0_i32_0 = arith.constant 0 : i32
    return %arg0, %c0_i32 : i32, i32
  }
  func.func @transform_9(%arg0: i32) -> (i32, i32) {
    %c0_i32 = arith.constant 0 : i32
    %c0_i32_0 = arith.constant 0 : i32
    %c0_i32_1 = arith.constant 0 : i32
    return %c0_i32, %c0_i32_0 : i32, i32
  }
}

</mosaic_0001>

<bundles_post_ra>
// kernel: tpu_custom_call.1
= control target key start
LH: loop header
LB: loop body
LE: loop exit
PB: predicated region body
PF: predicated region fallthrough
CT: control target
= control target key end

     0   :  { %15 = vsyncpa [#allocation6], 0  ;;  %s3275_s0 = inlined_call_operand.vmem [shape: f32[48,10], index: 0, kind: input, shape index: {}]   ;;  %s3276_s1 = inlined_call_operand.vmem [shape: f32[8,128], index: 1, kind: input, shape index: {}]   ;;  %s3277_s2 = inlined_call_operand.vmem [shape: f32[10,384], index: 2, kind: input, shape index: {}]   ;;  %s3278_s3 = inlined_call_operand.hbm [shape: f32[128,384], index: 3, kind: input, shape index: {}]   ;;  %s3279_s4 = inlined_call_operand.vmem [shape: f32[1,384], index: 4, kind: input, shape index: {}]   ;;  %s3280_s5 = inlined_call_operand.vmem [shape: f32[1,128], index: 5, kind: input, shape index: {}]   ;;  %s3281_s6 = inlined_call_operand.hbm [shape: f32[128,128], index: 6, kind: input, shape index: {}]   ;;  %s3282_s7 = inlined_call_operand.vmem [shape: f32[1,128], index: 7, kind: input, shape index: {}]   ;;  %s3283_s8 = inlined_call_operand.hbm [shape: f32[48,128], index: 8, kind: output, shape index: {0}]   ;;  %s3284_s9 = inlined_call_operand.hbm [shape: f32[8,128], index: 9, kind: output, shape index: {1}]  }
   0x1   :  { %16 = vsyncpa [#allocation9], 0 }
   0x2   :  { %17 = vsyncpa [#allocation7], 0 }
   0x3   :  { %18 = vsyncpa [#allocation12], 0  ;;  %s2721_s30 = smov [#allocation5]   ;;  %s2625_s13 = scalar_lea.hbm %s3278_s3, 6144 }
   0x4   :  { %s30_s10 = sshll.u32 %s2721_s30, 4  ;;  %p2626_p0 = scmp.ne.s32.totalorder %s3278_s3, %s2625_s13  ;;  %s31_s10 = int_to_ptr.vmem [resolvable:$true] %s30_s10 }
   0x5   :  { %p2629_p1 = scmp.lt.u32.totalorder %s2625_s13, %s3278_s3 }
   0x7   :  { %p2631_p2 = pnand %p2629_p1, %p2626_p0 }
   0x9   :  { %2634 = shalt.err (!%p2631_p2)
}
   0xa   :  { %s2635_s18 = scalar_lea.vmem %s31_s10, 6144  ;;  %p2640_p4 = scmp.lt.s32.totalorder %s31_s10, %s31_s10 }
   0xb   :  { %p2636_p3 = scmp.ne.s32.totalorder %s31_s10, %s2635_s18  ;;  %p2641_p5 = scmp.lt.s32.totalorder %s2635_s18, %s2635_s18 }
   0xd   :  { %p2642_p6 = por %p2641_p5, %p2640_p4 }
   0xf   :  { %p2643_p7 = pnand %p2642_p6, %p2636_p3 }
  0x11   :  { %2646 = shalt.err (!%p2643_p7)
}
  0x12   :  { %s2722_s19 = smov 384   ;;  %s2723_s20 = smov 24  }
  0x13   :  { %36 = dma.hbm_to_vmem [thread:$0]  %s3278_s3, 6144, %s31_s10, [#allocation6], %s2722_s19, %s2722_s19, %s2723_s20  }
  0x14   :  { %s2724_s23 = smov [#allocation8]   ;;  %s2647_s27 = scalar_lea.hbm %s3281_s6, 2048 }
  0x15   :  { %s46_s24 = sshll.u32 %s2724_s23, 4  ;;  %p2648_p8 = scmp.ne.s32.totalorder %s3281_s6, %s2647_s27  ;;  %s47_s24 = int_to_ptr.vmem [resolvable:$true] %s46_s24 }
  0x16   :  { %p2651_p9 = scmp.lt.u32.totalorder %s2647_s27, %s3281_s6 }
  0x18   :  { %p2653_p10 = pnand %p2651_p9, %p2648_p8 }
  0x1a   :  { %2656 = shalt.err (!%p2653_p10)
}
  0x1b   :  { %s2657_s12 = scalar_lea.vmem %s47_s24, 2048  ;;  %p2662_p12 = scmp.lt.s32.totalorder %s47_s24, %s47_s24 }
  0x1c   :  { %p2658_p11 = scmp.ne.s32.totalorder %s47_s24, %s2657_s12  ;;  %p2663_p13 = scmp.lt.s32.totalorder %s2657_s12, %s2657_s12 }
  0x1e   :  { %p2664_p0 = por %p2663_p13, %p2662_p12 }
  0x20   :  { %p2665_p1 = pnand %p2664_p0, %p2658_p11 }
  0x22   :  { %2668 = shalt.err (!%p2665_p1)
}
  0x23   :  { %s2725_s3 = smov 128   ;;  %s2726_s10 = smov 8  }
  0x24   :  { %52 = dma.hbm_to_vmem [thread:$0]  %s3281_s6, 2048, %s47_s24, [#allocation9], %s2725_s3, %s2725_s3, %s2726_s10  }
  0x25   :  { %2713 = dma.done.wait [#allocation6], 6144  }
  0x26   :  { %2714 = vsyncadd [#allocation6], 4294961152 }
  0x27   :  { %2715 = dma.done.wait [#allocation9], 2048  }
  0x28   :  { %2716 = vsyncadd [#allocation9], 4294965248  ;;  %v2727_v0 = vmov 0.0   ;;  %vm115_vm0 = vcmask 1041408   ;;  %vm96_vm1 = vcmask 80896   ;;  %vm2728_vm2 = vmmov 1  }
  0x29   :  { %189 = vmatprep.mubr.f32.mxu0 %v2727_v0  ;;  %vm2811_vm3 = vmpackc.low %vm115_vm0, %vm2728_vm2  ;;  %v75_v2 = vld [vmem:[%s3277_s2 + $0x10] sm:$0xff]  ;;  %v78_v3 = vld [vmem:[%s3277_s2 + $0x28] sm:$0x3]  ;;  %vm2730_vm4 = vmmov 0  }
  0x2a   :  { %v2824_v4 = vld [vmem:[%s3275_s0] sm:$0xff]  ;;  %v2107_v5 = vpack.c.bf16 %v78_v3, %v75_v2  ;;  %v340_v6 = vld [vmem:[#allocation5 + $0x8] sm:$0xff]  ;;  %v343_v7 = vld [vmem:[#allocation5 + $0x20] sm:$0xff] }
  0x2b   :  { %1841 = vmatprep.mubr.msk.f32.mxu1 %vm96_vm1, %v2824_v4  ;;  %v2828_v8 = vpack.c.bf16 %v343_v7, %v340_v6  ;;  %v339_v9 = vld [vmem:[#allocation5] sm:$0xff]  ;;  %v342_v10 = vld [vmem:[#allocation5 + $0x18] sm:$0xff]  ;;  %v349_v12 = vld [vmem:[#allocation5 + $0x50] sm:$0xff]  ;;  %v2729_v6 = vmov 0.0|0.0  }
  0x2c   :  { %v346_v11 = vld [vmem:[#allocation5 + $0x38] sm:$0xff]  ;;  %2109 = vmatprep.subr.msk.bf16.mxu1 %vm2811_vm3, %v2107_v5  ;;  %v2839_v14 = vpack.c.bf16 %v342_v10, %v339_v9  ;;  %v345_v16 = vld [vmem:[#allocation5 + $0x30] sm:$0xff]  ;;  %v348_v17 = vld [vmem:[#allocation5 + $0x48] sm:$0xff] }
  0x2d   :  { %2112 = vmatpush3.bf16.msk.msra.mxu1 %vm2811_vm3, %v2107_v5  ;;  %v2837_v13 = vld [vmem:[%s3275_s0 + $0x8] sm:$0xff]  ;;  %v2842_v15 = vpack.c.bf16 %v349_v12, %v346_v11  ;;  %v352_v18 = vld [vmem:[#allocation5 + $0x68] sm:$0xff]  ;;  %v355_v19 = vld [vmem:[#allocation5 + $0x80] sm:$0xff]  ;;  %v2847_v20 = vpack.c.bf16 %v348_v17, %v345_v16 }
  0x2e   :  { %2114 = vmatprep.subr.bf16.mxu1 %v2828_v8  ;;  %v351_v21 = vld [vmem:[#allocation5 + $0x60] sm:$0xff]  ;;  %v2850_v22 = vpack.c.bf16 %v355_v19, %v352_v18  ;;  %v354_v23 = vld [vmem:[#allocation5 + $0x78] sm:$0xff]  ;;  %v2858_v25 = vld [vmem:[%s3275_s0 + $0x18] sm:$0xff] }
  0x2f   :  { %v69_v24 = vld [vmem:[%s3275_s0 + $0x10] sm:$0xff]  ;;  %v358_v26 = vld [vmem:[#allocation5 + $0x98] sm:$0xff]  ;;  %v361_v27 = vld [vmem:[#allocation5 + $0xb0] sm:$0xff]  ;;  %v2870_v30 = vpack.c.bf16 %v354_v23, %v351_v21 }
  0x30   :  { %1842 = vmatmul.mubr.msk.f32.vlgmr.msra.gmra.mrb[0].mxu1 %vm96_vm1, %v2837_v13  ;;  %v74_v28 = vld [vmem:[%s3277_s2 + $0x8] sm:$0xff]  ;;  %v77_v29 = vld [vmem:[%s3277_s2 + $0x20] sm:$0x3]  ;;  %v76_v33 = vld [vmem:[%s3277_s2 + $0x18] sm:$0x3]  ;;  %v2884_v35 = vpack.c.bf16 %v361_v27, %v358_v26 }
  0x31   :  { %2116 = vmatpush1.bf16.msra.mxu1 %v2839_v14  ;;  %1844 = vmatprep.mubr.msk.f32.mxu1 %vm96_vm1, %v69_v24  ;;  %v2101_v31 = vpack.c.bf16 %v77_v29, %v74_v28  ;;  %v73_v32 = vld [vmem:[%s3277_s2] sm:$0xff]  ;;  %v360_v37 = vld [vmem:[#allocation5 + $0xa8] sm:$0xff]  ;;  %v2891_v39 = vld [vmem:[%s3275_s0 + $0x28] sm:$0xff] }
  0x32   :  { %2118 = vmatprep.subr.bf16.mxu1 %v2842_v15  ;;  %v2881_v34 = vld [vmem:[%s3275_s0 + $0x20] sm:$0xff]  ;;  %v2104_v38 = vpack.c.bf16 %v76_v33, %v73_v32  ;;  %v364_v40 = vld [vmem:[#allocation5 + $0xc8] sm:$0xff]  ;;  %v367_v41 = vld [vmem:[#allocation5 + $0xe0] sm:$0xff] }
  0x33   :  { %v357_v36 = vld [vmem:[#allocation5 + $0x90] sm:$0xff]  ;;  %2103 = vmatprep.subr.msk.bf16.mxu0 %vm2811_vm3, %v2101_v31  ;;  %v2904_v43 = vpack.c.bf16 %v367_v41, %v364_v40  ;;  %v363_v44 = vld [vmem:[#allocation5 + $0xc0] sm:$0xff]  ;;  %v366_v45 = vld [vmem:[#allocation5 + $0xd8] sm:$0xff] }
  0x34   :  { %1845 = vmatmul.mubr.msk.f32.gmra.mrb[2].mxu1 %vm96_vm1, %v2858_v25  ;;  %2106 = vmatpush1.bf16.msk.msra.mxu0 %vm2811_vm3, %v2104_v38  ;;  %v2900_v42 = vpack.c.bf16 %v360_v37, %v357_v36  ;;  %v370_v46 = vld [vmem:[#allocation5 + $0xf8] sm:$0xff]  ;;  %v373_v47 = vld [vmem:[#allocation5 + $0x110] sm:$0xff]  ;;  %v2912_v48 = vpack.c.bf16 %v366_v45, %v363_v44  ;;  %v372_v51 = vld [vmem:[#allocation5 + $0x108] sm:$0xff] }
  0x35   :  { %2120 = vmatpush1.bf16.msra.mxu1 %v2847_v20  ;;  %1847 = vmatprep.mubr.msk.f32.mxu1 %vm96_vm1, %v2881_v34  ;;  %v2916_v49 = vpack.c.bf16 %v373_v47, %v370_v46  ;;  %v369_v50 = vld [vmem:[#allocation5 + $0xf0] sm:$0xff]  ;;  %v376_v52 = vld [vmem:[#allocation5 + $0x128] sm:$0xff]  ;;  %v379_v53 = vld [vmem:[#allocation5 + $0x140] sm:$0xff] }
  0x36   :  { %2122 = vmatprep.subr.bf16.mxu1 %v2850_v22  ;;  %2170 = vmatprep.subr.bf16.mxu0 %v2828_v8  ;;  %v2923_v54 = vpack.c.bf16 %v372_v51, %v369_v50  ;;  %v2927_v55 = vpack.c.bf16 %v379_v53, %v376_v52  ;;  %v375_v56 = vld [vmem:[#allocation5 + $0x120] sm:$0xff]  ;;  %v378_v57 = vld [vmem:[#allocation5 + $0x138] sm:$0xff]  ;;  %v385_v59 = vld [vmem:[#allocation5 + $0x170] sm:$0xff] }
  0x37   :  { %1666 = vmatmul.mubr.msk.f32.vlgmr.msra.gmra.mrb[0].mxu0 %vm96_vm1, %v2824_v4  ;;  %v382_v58 = vld [vmem:[#allocation5 + $0x158] sm:$0xff]  ;;  %v2933_v60 = vpack.c.bf16 %v378_v57, %v375_v56  ;;  %v381_v62 = vld [vmem:[#allocation5 + $0x150] sm:$0xff]  ;;  %v384_v63 = vld [vmem:[#allocation5 + $0x168] sm:$0xff] }
  0x38   :  { %1848 = vmatmul.mubr.msk.f32.gmra.mrb[4].mxu1 %vm96_vm1, %v2891_v39  ;;  %2172 = vmatpush1.bf16.msra.mxu0 %v2839_v14  ;;  %v2937_v61 = vpack.c.bf16 %v385_v59, %v382_v58  ;;  %v2944_v1 = vpack.c.bf16 %v384_v63, %v381_v62  ;;  %v341_v2 = vld [vmem:[#allocation5 + $0x10] sm:$0xff]  ;;  %v344_v3 = vld [vmem:[#allocation5 + $0x28] sm:$0xff]  ;;  %v347_v7 = vld [vmem:[#allocation5 + $0x40] sm:$0xff] }
  0x39   :  { %2124 = vmatpush1.bf16.msra.mxu1 %v2870_v30  ;;  %459 = vmatprep.mubr.f32.mxu1 %v2727_v0  ;;  %v2956_v4 = vld [vmem:[%s3276_s1] sm:$0xff]  ;;  %v2958_v5 = vpack.c.bf16 %v344_v3, %v341_v2  ;;  %v350_v9 = vld [vmem:[#allocation5 + $0x58] sm:$0xff]  ;;  %v356_v12 = vld [vmem:[#allocation5 + $0x88] sm:$0xff] }
  0x3a   :  { %2126 = vmatprep.subr.bf16.mxu1 %v2884_v35  ;;  %195 = vmatprep.mubr.f32.mxu0 %v2727_v0  ;;  %v2967_v10 = vpack.c.bf16 %v350_v9, %v347_v7  ;;  %v353_v11 = vld [vmem:[#allocation5 + $0x70] sm:$0xff]  ;;  %v359_v16 = vld [vmem:[#allocation5 + $0xa0] sm:$0xff]  ;;  %v362_v17 = vld [vmem:[#allocation5 + $0xb8] sm:$0xff] }
  0x3b   :  { %2174 = vmatprep.subr.bf16.mxu0 %v2842_v15  ;;  %1667 = vmatmul.mubr.msk.f32.gmra.mrb[2].mxu0 %vm96_vm1, %v2837_v13  ;;  %v2976_v13 = vpack.c.bf16 %v356_v12, %v353_v11  ;;  %v2982_v18 = vpack.c.bf16 %v362_v17, %v359_v16  ;;  %v365_v19 = vld [vmem:[#allocation5 + $0xd0] sm:$0xff]  ;;  %v368_v21 = vld [vmem:[#allocation5 + $0xe8] sm:$0xff]  ;;  %v383_v31 = vld [vmem:[#allocation5 + $0x160] sm:$0xff] }
  0x3c   :  { %2176 = vmatpush1.bf16.msra.mxu0 %v2847_v20  ;;  %201 = vmatprep.mubr.f32.mxu0 %v2727_v0  ;;  %v2987_v23 = vpack.c.bf16 %v368_v21, %v365_v19  ;;  %v377_v27 = vld [vmem:[#allocation5 + $0x130] sm:$0xff]  ;;  %v380_v28 = vld [vmem:[#allocation5 + $0x148] sm:$0xff]  ;;  %v386_v32 = vld [vmem:[#allocation5 + $0x178] sm:$0xff] }
  0x3d   :  { %2128 = vmatpush1.bf16.msra.mxu1 %v2900_v42  ;;  %2178 = vmatprep.subr.bf16.mxu0 %v2850_v22  ;;  %v2995_v29 = vpack.c.bf16 %v380_v28, %v377_v27  ;;  %v2999_v33 = vpack.c.bf16 %v386_v32, %v383_v31  ;;  %v79_v38 = vld [vmem:[%s3279_s4] sm:$0x7] }
  0x3e   :  { %2130 = vmatprep.subr.bf16.mxu1 %v2904_v43  ;;  %v3045_v27 = vld [vmem:[%s3280_s5] ss:$0 sm:$0xff] }
  0x3f   :  { %1668 = vmatmul.mubr.msk.f32.gmra.mrb[4].mxu0 %vm96_vm1, %v69_v24  ;;  %v371_v24 = vld [vmem:[#allocation5 + $0x100] sm:$0xff] }
  0x40   :  { %2180 = vmatpush1.bf16.msra.mxu0 %v2870_v30  ;;  %207 = vmatprep.mubr.f32.mxu0 %v2727_v0 }
  0x41   :  { %2132 = vmatpush1.bf16.msra.mxu1 %v2912_v48  ;;  %2182 = vmatprep.subr.bf16.mxu0 %v2884_v35 }
  0x42   :  { %2134 = vmatprep.subr.bf16.mxu1 %v2916_v49 }
  0x43   :  { %1669 = vmatmul.mubr.msk.f32.gmra.mrb[6].mxu0 %vm96_vm1, %v2858_v25  ;;  %v374_v25 = vld [vmem:[#allocation5 + $0x118] sm:$0xff] }
  0x44   :  { %2184 = vmatpush1.bf16.msra.mxu0 %v2900_v42  ;;  %213 = vmatprep.mubr.f32.mxu0 %v2727_v0  ;;  %v2991_v26 = vpack.c.bf16 %v374_v25, %v371_v24 }
  0x45   :  { %2136 = vmatpush1.bf16.msra.mxu1 %v2923_v54  ;;  %2186 = vmatprep.subr.bf16.mxu0 %v2904_v43 }
  0x46   :  { %2138 = vmatprep.subr.bf16.mxu1 %v2927_v55 }
  0x47   :  { %1670 = vmatmul.mubr.msk.f32.gmra.mrb[8].mxu0 %vm96_vm1, %v2881_v34  ;;  %v81_v34 = vlaneseq }
  0x48   :  { %2188 = vmatpush1.bf16.msra.mxu0 %v2912_v48  ;;  %219 = vmatprep.mubr.f32.mxu0 %v2727_v0 }
  0x49   :  { %2140 = vmatpush1.bf16.msra.mxu1 %v2933_v60  ;;  %2190 = vmatprep.subr.bf16.mxu0 %v2916_v49  ;;  %v82_v36 = vshrl.u32 %v81_v34, 7 }
  0x4a   :  { %2142 = vmatprep.subr.bf16.mxu1 %v2937_v61 }
  0x4b   :  { %1671 = vmatmul.mubr.msk.f32.gmra.mrb[10].mxu0 %vm96_vm1, %v2891_v39  ;;  %v91_v37 = vsub.s32 2, %v82_v36  ;;  %v83_v59 = vsub.s32 0, %v82_v36  ;;  %v87_v62 = vsub.s32 1, %v82_v36 }
  0x4c   :  { %2192 = vmatpush1.bf16.msra.mxu0 %v2923_v54  ;;  %635 = vmatprep.mubr.f32.mxu0 %v2727_v0 }
  0x4d   :  { %2144 = vmatpush1.bf16.msra.mxu1 %v2944_v1  ;;  %2194 = vmatprep.subr.bf16.mxu0 %v2927_v55  ;;  %v92_v39 = vrot.slane %v79_v38, %v91_v37  ;;  %v3036_v63 = vrot.slane %v79_v38, %v83_v59  ;;  %v3038_v2 = vrot.slane %v79_v38, %v87_v62 }
  0x4e   :  { %2145 = vmatprep.subr.bf16.mxu1 %v2729_v6 }
  0x50   :  { %460 = vmatmul.mubr.f32.vlgmr.msra.gmra.mrb[6].mxu1 %v2956_v4  ;;  %2196 = vmatpush1.bf16.msra.mxu0 %v2933_v60 }
  0x51   :  { %2147 = vmatpush3.bf16.msra.mxu1 %v2958_v5  ;;  %1882 = vmatprep.mubr.msk.f32.mxu1 %vm2730_vm4, %v2727_v0 }
  0x52   :  { %2148 = vmatprep.subr.bf16.mxu1 %v2729_v6  ;;  %2198 = vmatprep.subr.bf16.mxu0 %v2937_v61 }
  0x54   :  { %2200 = vmatpush1.bf16.msra.mxu0 %v2944_v1 }
  0x55   :  { %2150 = vmatpush3.bf16.msra.mxu1 %v2967_v10  ;;  %2226 = vmatprep.subr.bf16.mxu0 %v2828_v8 }
  0x56   :  { %2151 = vmatprep.subr.bf16.mxu1 %v2729_v6 }
  0x59   :  { %2153 = vmatpush3.bf16.msra.mxu1 %v2976_v13 }
  0x5a   :  { %2154 = vmatprep.subr.bf16.mxu1 %v2729_v6 }
  0x5d   :  { %2156 = vmatpush3.bf16.msra.mxu1 %v2982_v18 }
  0x5e   :  { %2157 = vmatprep.subr.bf16.mxu1 %v2729_v6 }
  0x61   :  { %2159 = vmatpush3.bf16.msra.mxu1 %v2987_v23 }
  0x62   :  { %2160 = vmatprep.subr.bf16.mxu1 %v2729_v6 }
  0x65   :  { %2162 = vmatpush3.bf16.msra.mxu1 %v2991_v26 }
  0x66   :  { %2163 = vmatprep.subr.bf16.mxu1 %v2729_v6 }
  0x69   :  { %2165 = vmatpush3.bf16.msra.mxu1 %v2995_v29 }
  0x6a   :  { %2166 = vmatprep.subr.bf16.mxu1 %v2729_v6 }
  0x6d   :  { %2168 = vmatpush3.bf16.msra.mxu1 %v2999_v33 }
  0x6e   :  { %2201 = vmatprep.subr.bf16.mxu1 %v2729_v6 }
  0x70   :  { %1883 = vmatmul.mubr.f32.vlgmr.msra.gmra.mrb[8].mxu1 %v2956_v4 }
  0x71   :  { %2203 = vmatpush3.bf16.msra.mxu1 %v2958_v5  ;;  %1917 = vmatprep.mubr.msk.f32.mxu1 %vm2730_vm4, %v2727_v0 }
  0x72   :  { %2204 = vmatprep.subr.bf16.mxu1 %v2729_v6 }
  0x75   :  { %2206 = vmatpush3.bf16.msra.mxu1 %v2967_v10 }
  0x76   :  { %2207 = vmatprep.subr.bf16.mxu1 %v2729_v6 }
  0x79   :  { %2209 = vmatpush3.bf16.msra.mxu1 %v2976_v13 }
  0x7a   :  { %2210 = vmatprep.subr.bf16.mxu1 %v2729_v6 }
  0x7d   :  { %2212 = vmatpush3.bf16.msra.mxu1 %v2982_v18 }
  0x7e   :  { %2213 = vmatprep.subr.bf16.mxu1 %v2729_v6 }
  0x81   :  { %2215 = vmatpush3.bf16.msra.mxu1 %v2987_v23 }
  0x82   :  { %2216 = vmatprep.subr.bf16.mxu1 %v2729_v6 }
  0x85   :  { %2218 = vmatpush3.bf16.msra.mxu1 %v2991_v26 }
  0x86   :  { %2219 = vmatprep.subr.bf16.mxu1 %v2729_v6 }
  0x89   :  { %2221 = vmatpush3.bf16.msra.mxu1 %v2995_v29 }
  0x8a   :  { %2222 = vmatprep.subr.bf16.mxu1 %v2729_v6 }
  0x8d   :  { %2224 = vmatpush3.bf16.msra.mxu1 %v2999_v33 }
  0x8e   :  { %2257 = vmatprep.subr.bf16.mxu1 %v2729_v6 }
 0x103   :  { %v1843_v40 = vpop.f32.mrb[0].mxu1 }
 0x104   :  { %v3026_v41 = vadd.f32 %v1843_v40, %v92_v39  ;;  %v292_v44 = vpop.f32.mrb[1].mxu1 }
 0x105   :  { %v293_v37 = vadd.f32 %v292_v44, %v92_v39 }
 0x107   :  { %v1846_v45 = vpop.f32.mrb[2].mxu1 }
 0x108   :  { %v3028_v46 = vadd.f32 %v1846_v45, %v92_v39  ;;  %v302_v47 = vpop.f32.mrb[3].mxu1 }
 0x109   :  { %v3030_v50 = vadd.f32 %v302_v47, %v92_v39 }
 0x10a   :  { %v191_v57 = vpop.f32.mrb[0].mxu0 }
 0x10b   :  { %v1849_v51 = vpop.f32.mrb[4].mxu1  ;;  %v193_v58 = vpop.f32.mrb[1].mxu0  ;;  %v192_v3 = vadd.f32 %v191_v57, %v3036_v63 }
 0x10c   :  { %v3032_v52 = vadd.f32 %v1849_v51, %v92_v39  ;;  %v312_v53 = vpop.f32.mrb[5].mxu1  ;;  %v194_v7 = vadd.f32 %v193_v58, %v3038_v2 }
 0x10d   :  { %v3034_v56 = vadd.f32 %v312_v53, %v92_v39 }
 0x123   :  { %v461_v9 = vpop.f32.mrb[6].mxu1 }
 0x124   :  { %v536_v11 = vadd.f32 %v461_v9, %v192_v3  ;;  %v463_v12 = vpop.f32.mrb[7].mxu1 }
 0x125   :  { %v543_v16 = vadd.f32 %v463_v12, %v194_v7 }
 0x126   :  { %v1679_v17 = vmul.f32 -1.442695, %v536_v11 }
 0x127   :  { %v1680_v19 = vmul.f32 -1.442695, %v543_v16 }
 0x128   :  { %2517 = vpow2.f32 %v1679_v17 }
 0x129   :  { %2519 = vpow2.f32 %v1680_v19 }
 0x132   :  { %v2518_v21 = vpop.eup %2517 }
 0x133   :  { %v540_v24 = vadd.f32 1.0, %v2518_v21  ;;  %v2520_v25 = vpop.eup %2519 }
 0x134   :  { %v547_v28 = vadd.f32 1.0, %v2520_v25 }
 0x135   :  { %2521 = vrcp.f32 %v540_v24 }
 0x136   :  { %2523 = vrcp.f32 %v547_v28 }
 0x13f   :  { %v2522_v36 = vpop.eup %2521 }
 0x140   :  { %v2524_v45 = vpop.eup %2523 }
 0x141   :  { %v560_v47 = vsub.f32 1.0, %v2524_v45  ;;  %v562_v57 = vmul.f32 %v2524_v45, %v2956_v4 }
 0x143   :  { %v532_v31 = vpop.f32.mrb[8].mxu1 }
 0x144   :  { %v556_v32 = vadd.f32 %v3045_v27, %v532_v31  ;;  %v1884_v34 = vpop.f32.mrb[9].mxu1 }
 0x146   :  { %v557_v38 = vmul.f32 %v2522_v36, %v556_v32 }
 0x148   :  { %v558_v40 = vadd.f32 %v557_v38, %v293_v37 }
 0x14a   :  { %2525 = vtanh.f32 %v558_v40 }
 0x154   :  { %v2526_v51 = vpop.eup %2525 }
 0x155   :  { %v561_v53 = vmul.f32 %v2526_v51, %v560_v47 }
 0x157   :  { %v3049_v58 = vadd.f32 %v562_v57, %v561_v53 }
 0x159   :  { %636 = vmatmul.mubr.f32.vlgmr.msra.gmra.mrb[2].mxu0 %v3049_v58  ;;  %1918 = vmatmul.mubr.f32.vlgmr.msra.gmra.mrb[10].mxu1 %v3049_v58 }
 0x15a   :  { %2228 = vmatpush1.bf16.msra.mxu0 %v2839_v14  ;;  %2259 = vmatpush3.bf16.msra.mxu1 %v2958_v5 }
 0x15b   :  { %2230 = vmatprep.subr.bf16.mxu0 %v2842_v15  ;;  %2260 = vmatprep.subr.bf16.mxu1 %v2729_v6 }
 0x15c   :  { %806 = vmatprep.mubr.f32.mxu0 %v2727_v0  ;;  %1952 = vmatprep.mubr.msk.f32.mxu1 %vm2730_vm4, %v2727_v0 }
 0x15e   :  { %2232 = vmatpush1.bf16.msra.mxu0 %v2847_v20  ;;  %2262 = vmatpush3.bf16.msra.mxu1 %v2967_v10 }
 0x15f   :  { %2234 = vmatprep.subr.bf16.mxu0 %v2850_v22  ;;  %2263 = vmatprep.subr.bf16.mxu1 %v2729_v6 }
 0x162   :  { %2236 = vmatpush1.bf16.msra.mxu0 %v2870_v30  ;;  %2265 = vmatpush3.bf16.msra.mxu1 %v2976_v13 }
 0x163   :  { %2238 = vmatprep.subr.bf16.mxu0 %v2884_v35  ;;  %2266 = vmatprep.subr.bf16.mxu1 %v2729_v6 }
 0x166   :  { %2240 = vmatpush1.bf16.msra.mxu0 %v2900_v42  ;;  %2268 = vmatpush3.bf16.msra.mxu1 %v2982_v18 }
 0x167   :  { %2242 = vmatprep.subr.bf16.mxu0 %v2904_v43  ;;  %2269 = vmatprep.subr.bf16.mxu1 %v2729_v6 }
 0x16a   :  { %2244 = vmatpush1.bf16.msra.mxu0 %v2912_v48  ;;  %2271 = vmatpush3.bf16.msra.mxu1 %v2987_v23 }
 0x16b   :  { %2246 = vmatprep.subr.bf16.mxu0 %v2916_v49  ;;  %2272 = vmatprep.subr.bf16.mxu1 %v2729_v6 }
 0x16e   :  { %2248 = vmatpush1.bf16.msra.mxu0 %v2923_v54  ;;  %2274 = vmatpush3.bf16.msra.mxu1 %v2991_v26 }
 0x16f   :  { %2250 = vmatprep.subr.bf16.mxu0 %v2927_v55  ;;  %2275 = vmatprep.subr.bf16.mxu1 %v2729_v6 }
 0x172   :  { %2252 = vmatpush1.bf16.msra.mxu0 %v2933_v60  ;;  %2277 = vmatpush3.bf16.msra.mxu1 %v2995_v29 }
 0x173   :  { %2254 = vmatprep.subr.bf16.mxu0 %v2937_v61  ;;  %2278 = vmatprep.subr.bf16.mxu1 %v2729_v6 }
 0x176   :  { %2256 = vmatpush1.bf16.msra.mxu0 %v2944_v1  ;;  %2280 = vmatpush3.bf16.msra.mxu1 %v2999_v33 }
 0x177   :  { %2282 = vmatprep.subr.bf16.mxu0 %v2828_v8  ;;  %2313 = vmatprep.subr.bf16.mxu1 %v2729_v6 }
 0x22c   :  { %v637_v4 = vpop.f32.mrb[2].mxu0  ;;  %v708_v39 = vpop.f32.mrb[10].mxu1 }
 0x22d   :  { %v2485_v44 = vadd.f32 %v637_v4, %v3036_v63  ;;  %v639_v59 = vpop.f32.mrb[3].mxu0  ;;  %v1919_v62 = vpop.f32.mrb[11].mxu1  ;;  %v726_v19 = vadd.f32 %v3045_v27, %v708_v39 }
 0x22e   :  { %v2486_v7 = vadd.f32 %v639_v59, %v3038_v2 }
 0x22f   :  { %v1682_v3 = vmul.f32 -1.442695, %v2485_v44 }
 0x230   :  { %v1683_v9 = vmul.f32 -1.442695, %v2486_v7 }
 0x231   :  { %2527 = vpow2.f32 %v1682_v3 }
 0x232   :  { %2529 = vpow2.f32 %v1683_v9 }
 0x23b   :  { %v2528_v11 = vpop.eup %2527 }
 0x23c   :  { %v716_v12 = vadd.f32 1.0, %v2528_v11  ;;  %v2530_v16 = vpop.eup %2529 }
 0x23d   :  { %v723_v17 = vadd.f32 1.0, %v2530_v16 }
 0x23e   :  { %2531 = vrcp.f32 %v716_v12 }
 0x23f   :  { %2533 = vrcp.f32 %v723_v17 }
 0x248   :  { %v2532_v21 = vpop.eup %2531 }
 0x249   :  { %v727_v24 = vmul.f32 %v2532_v21, %v726_v19  ;;  %v2534_v28 = vpop.eup %2533 }
 0x24a   :  { %v730_v31 = vsub.f32 1.0, %v2534_v28  ;;  %v732_v36 = vmul.f32 %v2534_v28, %v3049_v58 }
 0x24b   :  { %v728_v25 = vadd.f32 %v727_v24, %v3026_v41 }
 0x24d   :  { %2535 = vtanh.f32 %v728_v25 }
 0x257   :  { %v2536_v32 = vpop.eup %2535 }
 0x258   :  { %v731_v34 = vmul.f32 %v2536_v32, %v730_v31 }
 0x25a   :  { %v3093_v37 = vadd.f32 %v732_v36, %v731_v34 }
 0x25c   :  { %807 = vmatmul.mubr.f32.vlgmr.msra.gmra.mrb[4].mxu0 %v3093_v37  ;;  %1953 = vmatmul.mubr.f32.vlgmr.msra.gmra.mrb[12].mxu1 %v3093_v37 }
 0x25d   :  { %2284 = vmatpush1.bf16.msra.mxu0 %v2839_v14  ;;  %2315 = vmatpush3.bf16.msra.mxu1 %v2958_v5 }
 0x25e   :  { %2286 = vmatprep.subr.bf16.mxu0 %v2842_v15  ;;  %2316 = vmatprep.subr.bf16.mxu1 %v2729_v6 }
 0x25f   :  { %977 = vmatprep.mubr.f32.mxu0 %v2727_v0  ;;  %1987 = vmatprep.mubr.msk.f32.mxu1 %vm2730_vm4, %v2727_v0 }
 0x261   :  { %2288 = vmatpush1.bf16.msra.mxu0 %v2847_v20  ;;  %2318 = vmatpush3.bf16.msra.mxu1 %v2967_v10 }
 0x262   :  { %2290 = vmatprep.subr.bf16.mxu0 %v2850_v22  ;;  %2319 = vmatprep.subr.bf16.mxu1 %v2729_v6 }
 0x265   :  { %2292 = vmatpush1.bf16.msra.mxu0 %v2870_v30  ;;  %2321 = vmatpush3.bf16.msra.mxu1 %v2976_v13 }
 0x266   :  { %2294 = vmatprep.subr.bf16.mxu0 %v2884_v35  ;;  %2322 = vmatprep.subr.bf16.mxu1 %v2729_v6 }
 0x269   :  { %2296 = vmatpush1.bf16.msra.mxu0 %v2900_v42  ;;  %2324 = vmatpush3.bf16.msra.mxu1 %v2982_v18 }
 0x26a   :  { %2298 = vmatprep.subr.bf16.mxu0 %v2904_v43  ;;  %2325 = vmatprep.subr.bf16.mxu1 %v2729_v6 }
 0x26d   :  { %2300 = vmatpush1.bf16.msra.mxu0 %v2912_v48  ;;  %2327 = vmatpush3.bf16.msra.mxu1 %v2987_v23 }
 0x26e   :  { %2302 = vmatprep.subr.bf16.mxu0 %v2916_v49  ;;  %2328 = vmatprep.subr.bf16.mxu1 %v2729_v6 }
 0x271   :  { %2304 = vmatpush1.bf16.msra.mxu0 %v2923_v54  ;;  %2330 = vmatpush3.bf16.msra.mxu1 %v2991_v26 }
 0x272   :  { %2306 = vmatprep.subr.bf16.mxu0 %v2927_v55  ;;  %2331 = vmatprep.subr.bf16.mxu1 %v2729_v6 }
 0x275   :  { %2308 = vmatpush1.bf16.msra.mxu0 %v2933_v60  ;;  %2333 = vmatpush3.bf16.msra.mxu1 %v2995_v29 }
 0x276   :  { %2310 = vmatprep.subr.bf16.mxu0 %v2937_v61  ;;  %2334 = vmatprep.subr.bf16.mxu1 %v2729_v6 }
 0x279   :  { %2312 = vmatpush1.bf16.msra.mxu0 %v2944_v1  ;;  %2336 = vmatpush3.bf16.msra.mxu1 %v2999_v33 }
 0x27a   :  { %2338 = vmatprep.subr.bf16.mxu0 %v2828_v8  ;;  %2369 = vmatprep.subr.bf16.mxu1 %v2729_v6 }
 0x32f   :  { %v808_v41 = vpop.f32.mrb[4].mxu0  ;;  %v879_v38 = vpop.f32.mrb[12].mxu1 }
 0x330   :  { %v2487_v40 = vadd.f32 %v808_v41, %v3036_v63  ;;  %v810_v45 = vpop.f32.mrb[5].mxu0  ;;  %v1954_v47 = vpop.f32.mrb[13].mxu1  ;;  %v897_v62 = vadd.f32 %v3045_v27, %v879_v38 }
 0x331   :  { %v2488_v53 = vadd.f32 %v810_v45, %v3038_v2 }
 0x332   :  { %v1684_v51 = vmul.f32 -1.442695, %v2487_v40 }
 0x333   :  { %v1685_v57 = vmul.f32 -1.442695, %v2488_v53 }
 0x334   :  { %2537 = vpow2.f32 %v1684_v51 }
 0x335   :  { %2539 = vpow2.f32 %v1685_v57 }
 0x33e   :  { %v2538_v4 = vpop.eup %2537 }
 0x33f   :  { %v887_v39 = vadd.f32 1.0, %v2538_v4  ;;  %v2540_v44 = vpop.eup %2539 }
 0x340   :  { %v894_v59 = vadd.f32 1.0, %v2540_v44 }
 0x341   :  { %2541 = vrcp.f32 %v887_v39 }
 0x342   :  { %2543 = vrcp.f32 %v894_v59 }
 0x34b   :  { %v2542_v3 = vpop.eup %2541 }
 0x34c   :  { %v898_v7 = vmul.f32 %v2542_v3, %v897_v62  ;;  %v2544_v11 = vpop.eup %2543 }
 0x34d   :  { %v901_v12 = vsub.f32 1.0, %v2544_v11  ;;  %v903_v19 = vmul.f32 %v2544_v11, %v3093_v37 }
 0x34e   :  { %v899_v9 = vadd.f32 %v898_v7, %v3030_v50 }
 0x350   :  { %2545 = vtanh.f32 %v899_v9 }
 0x35a   :  { %v2546_v16 = vpop.eup %2545 }
 0x35b   :  { %v902_v17 = vmul.f32 %v2546_v16, %v901_v12  ;;  %v1467_v12 = vld [vmem:[#allocation8 + $0x20] sm:$0xff]  ;;  %v1468_v16 = vld [vmem:[#allocation8 + $0x28] sm:$0xff] }
 0x35d   :  { %v3137_v21 = vadd.f32 %v903_v19, %v902_v17  ;;  %v1693_v19 = vmul.f32 -1.442695, %v3093_v37 }
 0x35f   :  { %978 = vmatmul.mubr.f32.vlgmr.msra.gmra.mrb[6].mxu0 %v3137_v21  ;;  %1988 = vmatmul.mubr.f32.vlgmr.msra.gmra.mrb[14].mxu1 %v3137_v21 }
 0x360   :  { %2340 = vmatpush1.bf16.msra.mxu0 %v2839_v14  ;;  %2371 = vmatpush3.bf16.msra.mxu1 %v2958_v5 }
 0x361   :  { %2342 = vmatprep.subr.bf16.mxu0 %v2842_v15  ;;  %2372 = vmatprep.subr.bf16.mxu1 %v2729_v6 }
 0x362   :  { %1148 = vmatprep.mubr.f32.mxu0 %v2727_v0  ;;  %2022 = vmatprep.mubr.msk.f32.mxu1 %vm2730_vm4, %v2727_v0 }
 0x364   :  { %2344 = vmatpush1.bf16.msra.mxu0 %v2847_v20  ;;  %2374 = vmatpush3.bf16.msra.mxu1 %v2967_v10 }
 0x365   :  { %2346 = vmatprep.subr.bf16.mxu0 %v2850_v22  ;;  %2375 = vmatprep.subr.bf16.mxu1 %v2729_v6 }
 0x368   :  { %2348 = vmatpush1.bf16.msra.mxu0 %v2870_v30  ;;  %2377 = vmatpush3.bf16.msra.mxu1 %v2976_v13 }
 0x369   :  { %2350 = vmatprep.subr.bf16.mxu0 %v2884_v35  ;;  %2378 = vmatprep.subr.bf16.mxu1 %v2729_v6 }
 0x36c   :  { %2352 = vmatpush1.bf16.msra.mxu0 %v2900_v42  ;;  %2380 = vmatpush3.bf16.msra.mxu1 %v2982_v18 }
 0x36d   :  { %2354 = vmatprep.subr.bf16.mxu0 %v2904_v43  ;;  %2381 = vmatprep.subr.bf16.mxu1 %v2729_v6 }
 0x370   :  { %2356 = vmatpush1.bf16.msra.mxu0 %v2912_v48  ;;  %2383 = vmatpush3.bf16.msra.mxu1 %v2987_v23 }
 0x371   :  { %2358 = vmatprep.subr.bf16.mxu0 %v2916_v49  ;;  %2384 = vmatprep.subr.bf16.mxu1 %v2729_v6 }
 0x374   :  { %2360 = vmatpush1.bf16.msra.mxu0 %v2923_v54  ;;  %2386 = vmatpush3.bf16.msra.mxu1 %v2991_v26 }
 0x375   :  { %2362 = vmatprep.subr.bf16.mxu0 %v2927_v55  ;;  %2387 = vmatprep.subr.bf16.mxu1 %v2729_v6 }
 0x378   :  { %2364 = vmatpush1.bf16.msra.mxu0 %v2933_v60  ;;  %2389 = vmatpush3.bf16.msra.mxu1 %v2995_v29 }
 0x379   :  { %2366 = vmatprep.subr.bf16.mxu0 %v2937_v61  ;;  %2390 = vmatprep.subr.bf16.mxu1 %v2729_v6 }
 0x37c   :  { %2368 = vmatpush1.bf16.msra.mxu0 %v2944_v1  ;;  %2392 = vmatpush3.bf16.msra.mxu1 %v2999_v33 }
 0x37d   :  { %2394 = vmatprep.subr.bf16.mxu0 %v2828_v8  ;;  %2425 = vmatprep.subr.bf16.mxu1 %v2729_v6 }
 0x432   :  { %v979_v50 = vpop.f32.mrb[6].mxu0  ;;  %v1050_v24 = vpop.f32.mrb[14].mxu1 }
 0x433   :  { %v2489_v25 = vadd.f32 %v979_v50, %v3036_v63  ;;  %v981_v28 = vpop.f32.mrb[7].mxu0  ;;  %v1989_v31 = vpop.f32.mrb[15].mxu1  ;;  %v1068_v8 = vadd.f32 %v3045_v27, %v1050_v24  ;;  %v2457_v50 = vpack.c.bf16 %v1468_v16, %v1467_v12  ;;  %v1469_v24 = vld [vmem:[#allocation8 + $0x30] sm:$0xff] }
 0x434   :  { %v2490_v34 = vadd.f32 %v981_v28, %v3038_v2 }
 0x435   :  { %v1686_v32 = vmul.f32 -1.442695, %v2489_v25  ;;  %v1470_v25 = vld [vmem:[#allocation8 + $0x38] sm:$0xff] }
 0x436   :  { %v1687_v36 = vmul.f32 -1.442695, %v2490_v34  ;;  %v2461_v37 = vpack.c.bf16 %v1470_v25, %v1469_v24  ;;  %v1472_v34 = vld [vmem:[#allocation8 + $0x48] sm:$0xff] }
 0x437   :  { %2547 = vpow2.f32 %v1686_v32  ;;  %v1471_v32 = vld [vmem:[#allocation8 + $0x40] sm:$0xff] }
 0x438   :  { %2549 = vpow2.f32 %v1687_v36  ;;  %v1473_v36 = vld [vmem:[#allocation8 + $0x50] sm:$0xff] }
 0x441   :  { %v2548_v41 = vpop.eup %2547 }
 0x442   :  { %v1058_v38 = vadd.f32 1.0, %v2548_v41  ;;  %v2550_v40 = vpop.eup %2549  ;;  %v1474_v41 = vld [vmem:[#allocation8 + $0x58] sm:$0xff] }
 0x443   :  { %v1065_v45 = vadd.f32 1.0, %v2550_v40  ;;  %v2469_v40 = vpack.c.bf16 %v1474_v41, %v1473_v36 }
 0x444   :  { %2551 = vrcp.f32 %v1058_v38 }
 0x445   :  { %2553 = vrcp.f32 %v1065_v45 }
 0x44e   :  { %v2552_v47 = vpop.eup %2551 }
 0x44f   :  { %v1069_v51 = vmul.f32 %v2552_v47, %v1068_v8  ;;  %v2554_v57 = vpop.eup %2553  ;;  %v1475_v8 = vld [vmem:[#allocation8 + $0x60] sm:$0xff]  ;;  %v1476_v47 = vld [vmem:[#allocation8 + $0x68] sm:$0xff] }
 0x450   :  { %v1072_v4 = vsub.f32 1.0, %v2554_v57  ;;  %v1074_v59 = vmul.f32 %v2554_v57, %v3137_v21 }
 0x451   :  { %v1070_v53 = vadd.f32 %v1069_v51, %v3028_v46  ;;  %v1465_v46 = vld [vmem:[#allocation8 + $0x10] sm:$0xff] }
 0x453   :  { %2555 = vtanh.f32 %v1070_v53 }
 0x45d   :  { %v2556_v39 = vpop.eup %2555 }
 0x45e   :  { %v1073_v44 = vmul.f32 %v2556_v39, %v1072_v4  ;;  %v2473_v4 = vpack.c.bf16 %v1476_v47, %v1475_v8 }
 0x460   :  { %v3181_v62 = vadd.f32 %v1074_v59, %v1073_v44  ;;  %v1477_v44 = vld [vmem:[#allocation8 + $0x70] sm:$0xff]  ;;  %v1478_v59 = vld [vmem:[#allocation8 + $0x78] sm:$0xff] }
 0x462   :  { %1149 = vmatmul.mubr.f32.vlgmr.msra.gmra.mrb[8].mxu0 %v3181_v62  ;;  %2023 = vmatmul.mubr.f32.vlgmr.msra.gmra.mrb[16].mxu1 %v3181_v62  ;;  %v1695_v28 = vmul.f32 -1.442695, %v3181_v62 }
 0x463   :  { %2396 = vmatpush1.bf16.msra.mxu0 %v2839_v14  ;;  %2427 = vmatpush3.bf16.msra.mxu1 %v2958_v5  ;;  %v1464_v14 = vld [vmem:[#allocation8 + $0x8] sm:$0xff] }
 0x464   :  { %2398 = vmatprep.subr.bf16.mxu0 %v2842_v15  ;;  %2428 = vmatprep.subr.bf16.mxu1 %v2729_v6 }
 0x465   :  { %1319 = vmatprep.mubr.f32.mxu0 %v2727_v0  ;;  %2057 = vmatprep.mubr.msk.f32.mxu1 %vm2730_vm4, %v2727_v0  ;;  %v1463_v0 = vld [vmem:[#allocation8] sm:$0xff] }
 0x466   :  { %v2449_v15 = vpack.c.bf16 %v1464_v14, %v1463_v0  ;;  %v2477_v14 = vpack.c.bf16 %v1478_v59, %v1477_v44 }
 0x467   :  { %2400 = vmatpush1.bf16.msra.mxu0 %v2847_v20  ;;  %2430 = vmatpush3.bf16.msra.mxu1 %v2967_v10 }
 0x468   :  { %2402 = vmatprep.subr.bf16.mxu0 %v2850_v22  ;;  %2431 = vmatprep.subr.bf16.mxu1 %v2729_v6 }
 0x46b   :  { %2404 = vmatpush1.bf16.msra.mxu0 %v2870_v30  ;;  %2433 = vmatpush3.bf16.msra.mxu1 %v2976_v13 }
 0x46c   :  { %2406 = vmatprep.subr.bf16.mxu0 %v2884_v35  ;;  %2434 = vmatprep.subr.bf16.mxu1 %v2729_v6 }
 0x46f   :  { %2408 = vmatpush1.bf16.msra.mxu0 %v2900_v42  ;;  %2436 = vmatpush3.bf16.msra.mxu1 %v2982_v18 }
 0x470   :  { %2410 = vmatprep.subr.bf16.mxu0 %v2904_v43  ;;  %2437 = vmatprep.subr.bf16.mxu1 %v2729_v6 }
 0x473   :  { %2412 = vmatpush1.bf16.msra.mxu0 %v2912_v48  ;;  %2439 = vmatpush3.bf16.msra.mxu1 %v2987_v23 }
 0x474   :  { %2414 = vmatprep.subr.bf16.mxu0 %v2916_v49  ;;  %2440 = vmatprep.subr.bf16.mxu1 %v2729_v6 }
 0x477   :  { %2416 = vmatpush1.bf16.msra.mxu0 %v2923_v54  ;;  %2442 = vmatpush3.bf16.msra.mxu1 %v2991_v26 }
 0x478   :  { %2418 = vmatprep.subr.bf16.mxu0 %v2927_v55  ;;  %2443 = vmatprep.subr.bf16.mxu1 %v2729_v6 }
 0x47b   :  { %2420 = vmatpush1.bf16.msra.mxu0 %v2933_v60  ;;  %2445 = vmatpush3.bf16.msra.mxu1 %v2995_v29  ;;  %v1692_v60 = vmul.f32 -1.442695, %v3049_v58  ;;  %v1466_v58 = vld [vmem:[#allocation8 + $0x18] sm:$0xff] }
 0x47c   :  { %2422 = vmatprep.subr.bf16.mxu0 %v2937_v61  ;;  %2446 = vmatprep.subr.bf16.mxu1 %v2729_v6  ;;  %v2453_v11 = vpack.c.bf16 %v1466_v58, %v1465_v46 }
 0x47f   :  { %2424 = vmatpush1.bf16.msra.mxu0 %v2944_v1  ;;  %2448 = vmatpush3.bf16.msra.mxu1 %v2999_v33 }
 0x480   :  { %2450 = vmatprep.subr.bf16.mxu0 %v2449_v15 }
 0x535   :  { %v1150_v20 = vpop.f32.mrb[8].mxu0  ;;  %v1221_v22 = vpop.f32.mrb[16].mxu1 }
 0x536   :  { %v2491_v30 = vadd.f32 %v1150_v20, %v3036_v63  ;;  %v1152_v35 = vpop.f32.mrb[9].mxu0  ;;  %v2024_v42 = vpop.f32.mrb[17].mxu1  ;;  %v1239_v5 = vadd.f32 %v3045_v27, %v1221_v22 }
 0x537   :  { %v2492_v48 = vadd.f32 %v1152_v35, %v3038_v2 }
 0x538   :  { %v1688_v43 = vmul.f32 -1.442695, %v2491_v30 }
 0x539   :  { %v1689_v49 = vmul.f32 -1.442695, %v2492_v48 }
 0x53a   :  { %2557 = vpow2.f32 %v1688_v43 }
 0x53b   :  { %2559 = vpow2.f32 %v1689_v49 }
 0x544   :  { %v2558_v54 = vpop.eup %2557 }
 0x545   :  { %v1229_v55 = vadd.f32 1.0, %v2558_v54  ;;  %v2560_v61 = vpop.eup %2559 }
 0x546   :  { %v1236_v1 = vadd.f32 1.0, %v2560_v61 }
 0x547   :  { %2561 = vrcp.f32 %v1229_v55 }
 0x548   :  { %2563 = vpow2.f32 %v1692_v60 }
 0x549   :  { %2565 = vrcp.f32 %v1236_v1 }
 0x551   :  { %v2562_v6 = vpop.eup %2561 }
 0x552   :  { %v1240_v10 = vmul.f32 %v2562_v6, %v1239_v5  ;;  %v2564_v13 = vpop.eup %2563 }
 0x553   :  { %v1445_v23 = vadd.f32 1.0, %v2564_v13  ;;  %v2566_v26 = vpop.eup %2565 }
 0x554   :  { %v1241_v18 = vadd.f32 %v1240_v10, %v3034_v56  ;;  %v1243_v29 = vsub.f32 1.0, %v2566_v26  ;;  %v1245_v7 = vmul.f32 %v2566_v26, %v3181_v62  ;;  %v1694_v56 = vmul.f32 -1.442695, %v3137_v21 }
 0x555   :  { %v2465_v21 = vpack.c.bf16 %v1472_v34, %v1471_v32 }
 0x556   :  { %2567 = vtanh.f32 %v1241_v18 }
 0x557   :  { %2569 = vrcp.f32 %v1445_v23 }
 0x558   :  { %2571 = vpow2.f32 %v1693_v19 }
 0x559   :  { %2573 = vpow2.f32 %v1694_v56 }
 0x55a   :  { %2575 = vpow2.f32 %v1695_v28 }
 0x560   :  { %v2568_v33 = vpop.eup %2567 }
 0x561   :  { %v1244_v3 = vmul.f32 %v2568_v33, %v1243_v29  ;;  %v2570_v17 = vpop.eup %2569 }
 0x562   :  { %v2572_v38 = vpop.eup %2571 }
 0x563   :  { %v3224_v9 = vadd.f32 %v1245_v7, %v1244_v3  ;;  %v2574_v45 = vpop.eup %2573  ;;  %v1446_v51 = vadd.f32 1.0, %v2572_v38 }
 0x564   :  { %v2576_v53 = vpop.eup %2575  ;;  %v1447_v57 = vadd.f32 1.0, %v2574_v45 }
 0x565   :  { %1320 = vmatmul.mubr.f32.vlgmr.msra.gmra.mrb[10].mxu0 %v3224_v9  ;;  %2058 = vmatmul.mubr.f32.vlgmr.msra.gmra.mrb[18].mxu1 %v3224_v9  ;;  %v1696_v31 = vmul.f32 -1.442695, %v3224_v9  ;;  %v1448_v62 = vadd.f32 1.0, %v2576_v53 }
 0x566   :  { %2452 = vmatpush3.bf16.msra.mxu0 %v2449_v15  ;;  %2092 = vmatprep.mubr.f32.mxu0 %v2570_v17 }
 0x567   :  { %2454 = vmatprep.subr.bf16.mxu0 %v2453_v11  ;;  %2577 = vpow2.f32 %v1696_v31 }
 0x568   :  { %2579 = vrcp.f32 %v1446_v51 }
 0x569   :  { %2581 = vrcp.f32 %v1447_v57 }
 0x56a   :  { %2456 = vmatpush3.bf16.msra.mxu0 %v2453_v11  ;;  %2583 = vrcp.f32 %v1448_v62 }
 0x56b   :  { %2458 = vmatprep.subr.bf16.mxu0 %v2457_v50 }
 0x56e   :  { %2460 = vmatpush3.bf16.msra.mxu0 %v2457_v50 }
 0x56f   :  { %2462 = vmatprep.subr.bf16.mxu0 %v2461_v37 }
 0x571   :  { %v2578_v39 = vpop.eup %2577 }
 0x572   :  { %2464 = vmatpush3.bf16.msra.mxu0 %v2461_v37  ;;  %v1449_v0 = vadd.f32 1.0, %v2578_v39  ;;  %v2580_v15 = vpop.eup %2579 }
 0x573   :  { %2466 = vmatprep.subr.bf16.mxu0 %v2465_v21  ;;  %v2582_v20 = vpop.eup %2581 }
 0x574   :  { %2585 = vrcp.f32 %v1449_v0  ;;  %v2584_v22 = vpop.eup %2583 }
 0x576   :  { %2468 = vmatpush3.bf16.msra.mxu0 %v2465_v21 }
 0x577   :  { %2470 = vmatprep.subr.bf16.mxu0 %v2469_v40 }
 0x57a   :  { %2472 = vmatpush3.bf16.msra.mxu0 %v2469_v40 }
 0x57b   :  { %2474 = vmatprep.subr.bf16.mxu0 %v2473_v4 }
 0x57e   :  { %2476 = vmatpush3.bf16.msra.mxu0 %v2473_v4  ;;  %v2586_v30 = vpop.eup %2585 }
 0x57f   :  { %2478 = vmatprep.subr.bf16.mxu0 %v2477_v14 }
 0x582   :  { %2480 = vmatpush3.bf16.msra.mxu0 %v2477_v14 }
 0x585   :  { %2093 = vmatmul.mubr.f32.vlgmr.msra.gmra.mrb[12].mxu0 %v2580_v15 }
 0x586   :  { %2095 = vmatprep.mubr.f32.mxu0 %v2582_v20 }
 0x589   :  { %2096 = vmatmul.mubr.f32.gmra.mrb[14].mxu0 %v2584_v22 }
 0x58a   :  { %2098 = vmatprep.mubr.f32.mxu0 %v2586_v30 }
 0x638   :  { %v1321_v35 = vpop.f32.mrb[10].mxu0  ;;  %v1392_v42 = vpop.f32.mrb[18].mxu1 }
 0x639   :  { %v2493_v43 = vadd.f32 %v1321_v35, %v3036_v63  ;;  %v1323_v48 = vpop.f32.mrb[11].mxu0  ;;  %v2059_v49 = vpop.f32.mrb[19].mxu1  ;;  %v1410_v10 = vadd.f32 %v3045_v27, %v1392_v42  ;;  %v3238_v63 = vld [vmem:[%s3282_s7] ss:$0 sm:$0xff]  ;;  %s2731_s7 = smov [#allocation11]  }
 0x63a   :  { %v2494_v55 = vadd.f32 %v1323_v48, %v3038_v2  ;;  %s1645_s20 = sshll.u32 %s2731_s7, 4  ;;  %s1646_s20 = int_to_ptr.vmem [resolvable:$true] %s1645_s20 }
 0x63b   :  { %v1690_v54 = vmul.f32 -1.442695, %v2493_v43  ;;  %s2669_s21 = scalar_lea.vmem %s1646_s20, 128  ;;  %p2674_p3 = scmp.lt.s32.totalorder %s1646_s20, %s1646_s20 }
 0x63c   :  { %v1691_v60 = vmul.f32 -1.442695, %v2494_v55  ;;  %p2670_p2 = scmp.ne.s32.totalorder %s1646_s20, %s2669_s21  ;;  %p2675_p4 = scmp.lt.s32.totalorder %s2669_s21, %s2669_s21 }
 0x63d   :  { %2587 = vpow2.f32 %v1690_v54 }
 0x63e   :  { %2589 = vpow2.f32 %v1691_v60  ;;  %p2676_p5 = por %p2675_p4, %p2674_p3 }
 0x640   :  { %p2677_p6 = pnand %p2676_p5, %p2670_p2 }
 0x647   :  { %v2588_v61 = vpop.eup %2587 }
 0x648   :  { %v1400_v1 = vadd.f32 1.0, %v2588_v61  ;;  %v2590_v5 = vpop.eup %2589 }
 0x649   :  { %v1407_v6 = vadd.f32 1.0, %v2590_v5 }
 0x64a   :  { %2591 = vrcp.f32 %v1400_v1 }
 0x64b   :  { %2593 = vrcp.f32 %v1407_v6 }
 0x654   :  { %v2592_v13 = vpop.eup %2591 }
 0x655   :  { %v1411_v18 = vmul.f32 %v2592_v13, %v1410_v10  ;;  %v2594_v12 = vpop.eup %2593 }
 0x656   :  { %v1414_v17 = vsub.f32 1.0, %v2594_v12  ;;  %v1416_v50 = vmul.f32 %v2594_v12, %v3224_v9 }
 0x657   :  { %v1412_v2 = vadd.f32 %v1411_v18, %v3032_v52 }
 0x658   :  { %v2094_v23 = vpop.f32.mrb[12].mxu0 }
 0x659   :  { %2595 = vtanh.f32 %v1412_v2  ;;  %v1558_v26 = vadd.f32 %v2094_v23, %v3238_v63  ;;  %v1552_v29 = vpop.f32.mrb[13].mxu0 }
 0x65a   :  { %v1553_v33 = vadd.f32 %v3238_v63, %v1552_v29 }
 0x65b   :  { %v1700_v46 = vmul.f32 -1.442695, %v1558_v26 }
 0x65c   :  { %v1699_v58 = vmul.f32 -1.442695, %v1553_v33  ;;  %v2097_v27 = vpop.f32.mrb[14].mxu0 }
 0x65d   :  { %2597 = vpow2.f32 %v1700_v46  ;;  %v1568_v3 = vadd.f32 %v2097_v27, %v3238_v63  ;;  %v1562_v7 = vpop.f32.mrb[15].mxu0 }
 0x65e   :  { %2599 = vpow2.f32 %v1699_v58  ;;  %v1563_v11 = vadd.f32 %v3238_v63, %v1562_v7 }
 0x65f   :  { %v1702_v16 = vmul.f32 -1.442695, %v1568_v3 }
 0x660   :  { %v1701_v52 = vmul.f32 -1.442695, %v1563_v11 }
 0x661   :  { %2601 = vpow2.f32 %v1702_v16 }
 0x662   :  { %2603 = vpow2.f32 %v1701_v52 }
 0x663   :  { %v2596_v19 = vpop.eup %2595 }
 0x664   :  { %v1415_v56 = vmul.f32 %v2596_v19, %v1414_v17 }
 0x666   :  { %v1417_v24 = vadd.f32 %v1416_v50, %v1415_v56 }
 0x667   :  { %v2598_v25 = vpop.eup %2597 }
 0x668   :  { %v2600_v28 = vpop.eup %2599  ;;  %v1697_v31 = vmul.f32 -1.442695, %v1417_v24  ;;  %1626 = vst [vmem:[#allocation11] sm:$0xff] %v1417_v24  ;;  %v1600_v37 = vadd.f32 1.0, %v2598_v25 }
 0x669   :  { %v1599_v32 = vadd.f32 1.0, %v2600_v28 }
 0x66a   :  { %2605 = vpow2.f32 %v1697_v31 }
 0x66b   :  { %v2602_v34 = vpop.eup %2601  ;;  %2607 = vrcp.f32 %v1600_v37 }
 0x66c   :  { %v2604_v21 = vpop.eup %2603  ;;  %2609 = vrcp.f32 %v1599_v32  ;;  %v1602_v36 = vadd.f32 1.0, %v2602_v34 }
 0x66d   :  { %v1601_v41 = vadd.f32 1.0, %v2604_v21 }
 0x66e   :  { %2611 = vrcp.f32 %v1602_v36 }
 0x66f   :  { %2613 = vrcp.f32 %v1601_v41 }
 0x674   :  { %v2606_v38 = vpop.eup %2605 }
 0x675   :  { %v2608_v40 = vpop.eup %2607  ;;  %v1450_v45 = vadd.f32 1.0, %v2606_v38 }
 0x676   :  { %v2610_v9 = vpop.eup %2609  ;;  %1618 = vst [vmem:[#allocation10 + $0x8] sm:$0xff] %v2608_v40 }
 0x677   :  { %2615 = vrcp.f32 %v1450_v45  ;;  %1617 = vst [vmem:[#allocation10] sm:$0xff] %v2610_v9 }
 0x678   :  { %v2612_v8 = vpop.eup %2611 }
 0x679   :  { %v2614_v47 = vpop.eup %2613  ;;  %1620 = vst [vmem:[#allocation10 + $0x18] sm:$0xff] %v2612_v8 }
 0x67a   :  { %1619 = vst [vmem:[#allocation10 + $0x10] sm:$0xff] %v2614_v47 }
 0x681   :  { %v2616_v51 = vpop.eup %2615 }
 0x682   :  { %2099 = vmatmul.mubr.f32.gmra.mrb[16].mxu0 %v2616_v51 }
 0x683   :  { %2680 = shalt.err (!%p2677_p6)
}
 0x684   :  { %s2681_s24 = scalar_lea.hbm %s3284_s9, 128 }
 0x685   :  { %p2682_p7 = scmp.ne.s32.totalorder %s3284_s9, %s2681_s24  ;;  %p2685_p8 = scmp.lt.u32.totalorder %s2681_s24, %s3284_s9 }
 0x687   :  { %p2687_p9 = pnand %p2685_p8, %p2682_p7 }
 0x689   :  { %2690 = shalt.err (!%p2687_p9)
}
 0x68a   :  { %1648 = dma.vmem_to_hbm [thread:$0]  %s1646_s20, 128, %s3284_s9, [#allocation12]  }
 0x68b   :  { %s2732_s11 = smov [#allocation10]  }
 0x68c   :  { %s1632_s12 = sshll.u32 %s2732_s11, 4  ;;  %s1633_s12 = int_to_ptr.vmem [resolvable:$true] %s1632_s12 }
 0x68d   :  { %s2691_s9 = scalar_lea.vmem %s1633_s12, 768  ;;  %p2696_p11 = scmp.lt.s32.totalorder %s1633_s12, %s1633_s12 }
 0x68e   :  { %p2692_p10 = scmp.ne.s32.totalorder %s1633_s12, %s2691_s9  ;;  %p2697_p12 = scmp.lt.s32.totalorder %s2691_s9, %s2691_s9 }
 0x690   :  { %p2698_p13 = por %p2697_p12, %p2696_p11 }
 0x692   :  { %p2699_p0 = pnand %p2698_p13, %p2692_p10 }
 0x755   :  { %v2100_v53 = vpop.f32.mrb[16].mxu0 }
 0x756   :  { %v1578_v57 = vadd.f32 %v2100_v53, %v3238_v63  ;;  %v1572_v4 = vpop.f32.mrb[17].mxu0 }
 0x757   :  { %v1573_v39 = vadd.f32 %v3238_v63, %v1572_v4 }
 0x758   :  { %v1704_v44 = vmul.f32 -1.442695, %v1578_v57 }
 0x759   :  { %v1703_v59 = vmul.f32 -1.442695, %v1573_v39 }
 0x75a   :  { %2617 = vpow2.f32 %v1704_v44 }
 0x75b   :  { %2619 = vpow2.f32 %v1703_v59 }
 0x764   :  { %v2618_v62 = vpop.eup %2617 }
 0x765   :  { %v2620_v0 = vpop.eup %2619  ;;  %v1604_v14 = vadd.f32 1.0, %v2618_v62 }
 0x766   :  { %v1603_v15 = vadd.f32 1.0, %v2620_v0 }
 0x767   :  { %2621 = vrcp.f32 %v1604_v14 }
 0x768   :  { %2623 = vrcp.f32 %v1603_v15 }
 0x771   :  { %v2622_v20 = vpop.eup %2621 }
 0x772   :  { %v2624_v22 = vpop.eup %2623  ;;  %1622 = vst [vmem:[#allocation10 + $0x28] sm:$0xff] %v2622_v20 }
 0x773   :  { %1621 = vst [vmem:[#allocation10 + $0x20] sm:$0xff] %v2624_v22 }
 0x774   :  { %2702 = shalt.err (!%p2699_p0)
}
 0x775   :  { %s2703_s15 = scalar_lea.hbm %s3283_s8, 768 }
 0x776   :  { %p2704_p1 = scmp.ne.s32.totalorder %s3283_s8, %s2703_s15  ;;  %p2707_p2 = scmp.lt.u32.totalorder %s2703_s15, %s3283_s8 }
 0x778   :  { %p2709_p3 = pnand %p2707_p2, %p2704_p1 }
 0x77a   :  { %2712 = shalt.err (!%p2709_p3)
}
 0x77b   :  { %1638 = dma.vmem_to_hbm [thread:$0]  %s1633_s12, 768, %s3283_s8, [#allocation7], %s2725_s3, %s2725_s3, %s2726_s10  }
 0x77c   :  { %2717 = dma.done.wait [#allocation7], 768  }
 0x77d   :  { %2718 = vsyncadd [#allocation7], 4294966528 }
 0x77e   :  { %2719 = dma.done.wait [#allocation12], 128  }
 0x77f   :  { %2720 = vsyncadd [#allocation12], 4294967168 }
 0x780   :  { %1655 = vsyncpa [#allocation6], 1 }
 0x781   :  { %1656 = vsyncpa [#allocation9], 1 }
 0x782   :  { %1657 = vsyncpa [#allocation7], 1 }
 0x783   :  { %1658 = vsyncpa [#allocation12], 1 }

</bundles_post_ra>
